<compile_context>
chip_gen: v7x
topology: tpu7x:2x2x1
jax: 0.10.0
libtpu: 0.0.40
codegen_flags: <defaults>
</compile_context>

<pallas_src>
import functools

import jax
import jax.numpy as jnp
from jax import lax
from jax.experimental import pallas as pl
from jax.experimental.pallas import tpu as pltpu


# ----------------------------------------------------------------------------
# Fused kernel: conv-as-matmul + bias + ReLU + max-pool + argmax indices
# ----------------------------------------------------------------------------
def _make_fused_kernel(pool_h, pool_w, w_out):
    q_total = pool_h * pool_w

    def kernel(p_ref, w_ref, b_ref, base_ref, x2_ref, pool_ref, idx_ref):
        # p_ref   : (Q, TM, K)  bf16   patches, Q = pool window positions (row-major dh,dw)
        # w_ref   : (K, C)      bf16   conv weights (resident across the whole grid)
        # b_ref   : (1, C)      f32    conv bias
        # base_ref: (TM, 1)     i32    flat index of each window's top-left corner in (Ho, Wo)
        # x2_ref  : (Q, TM, C)  f32    ReLU(conv) output (window-major layout)
        # pool_ref: (TM, C)     f32    pooled max
        # idx_ref : (TM, C)     i32    PyTorch-style flat argmax indices
        wmat = w_ref[...]
        bias = b_ref[...]

        best = None
        best_dh = None
        best_dw = None
        for q in range(q_total):                       # unrolled, row-major (dh, dw) order
            dh, dw = q // pool_w, q % pool_w
            z = jnp.dot(p_ref[q], wmat, preferred_element_type=jnp.float32)
            z = jnp.maximum(z + bias, 0.0)             # fused bias + ReLU epilogue
            x2_ref[q] = z                              # full-resolution activation
            if q == 0:
                best = z
                best_dh = jnp.zeros(z.shape, jnp.int32)
                best_dw = jnp.zeros(z.shape, jnp.int32)
            else:
                better = z > best                      # strict ">" == PyTorch first-occurrence tie-break
                best = jnp.where(better, z, best)
                best_dh = jnp.where(better, dh, best_dh)
                best_dw = jnp.where(better, dw, best_dw)

        pool_ref[...] = best
        idx_ref[...] = base_ref[...] + best_dh * w_out + best_dw

    return kernel


def _pick_row_tile(m, cap=2048):
    """Largest divisor of m that is a multiple of 8 and <= cap (fallback: m itself)."""
    for d in range(min(m, cap), 7, -1):
        if m % d == 0 and d % 8 == 0:
            return d
    return m


# ----------------------------------------------------------------------------
# Glue: im2col for padded, strided convs on NCHW tensors (columns ordered (c_in, kh, kw))
# ----------------------------------------------------------------------------
def _im2col_nchw(x, kh, kw, pad_h, pad_w, sh, sw):
    n, c, h, w = x.shape
    xp = jnp.pad(x, ((0, 0), (0, 0), (pad_h, pad_h), (pad_w, pad_w)))
    ho = (h + 2 * pad_h - kh) // sh + 1
    wo = (w + 2 * pad_w - kw) // sw + 1
    cols = []
    for i in range(kh):
        for j in range(kw):
            cols.append(xp[:, :, i:i + sh * (ho - 1) + 1:sh, j:j + sw * (wo - 1) + 1:sw])
    p = jnp.stack(cols, axis=0)                 # (kh*kw, n, c, ho, wo)
    p = p.transpose(1, 3, 4, 2, 0)              # (n, ho, wo, c, kh*kw)
    return p.reshape(n * ho * wo, c * kh * kw), (ho, wo)


# ----------------------------------------------------------------------------
# Forward pass of SDNetNoBNEncoderBlock
# ----------------------------------------------------------------------------
def sdnet_no_bn_encoder_block(x, conv_w, conv_b, *, stride_conv=1, pool=2, stride_pool=2,
                              compute_dtype=jnp.bfloat16):
    n, c_in, h, w = x.shape
    c_out, c_in_w, kh, kw = conv_w.shape
    assert c_in == c_in_w
    pad_h, pad_w = (kh - 1) // 2, (kw - 1) // 2

    patches, (ho, wo) = _im2col_nchw(x, kh, kw, pad_h, pad_w, stride_conv, stride_conv)
    k_dim = c_in * kh * kw

    assert stride_pool == pool, "only non-overlapping pooling implemented"
    assert ho % pool == 0 and wo % pool == 0, "pooled dims must divide evenly"
    ho2, wo2 = ho // pool, wo // pool
    m2 = n * ho2 * wo2
    q_total = pool * pool

    # Reorder patch rows to (pool-window position, n, pooled_h, pooled_w) so pooling is
    # pure leading-dim indexing inside the kernel.
    patches = patches.reshape(n, ho2, pool, wo2, pool, k_dim)
    patches = patches.transpose(2, 4, 0, 1, 3, 5).reshape(q_total, m2, k_dim)
    patches = patches.astype(compute_dtype)

    w_mat = conv_w.reshape(c_out, k_dim).T.astype(compute_dtype)       # (K, C_out), lane = C_out
    bias = conv_b.reshape(1, c_out).astype(jnp.float32)

    # Flat (ho x wo) index of each pool window's top-left corner, one per pooled row.
    base = (jnp.arange(ho2, dtype=jnp.int32)[:, None] * stride_pool * wo
            + jnp.arange(wo2, dtype=jnp.int32)[None, :] * stride_pool)   # (ho2, wo2)
    base_idx = jnp.tile(base.reshape(-1), (n,)).reshape(m2, 1)

    tm = _pick_row_tile(m2, cap=2048)
    grid = (m2 // tm,)
    kernel = _make_fused_kernel(pool, pool, wo)

    x2_q, pooled, idx = pl.pallas_call(
        kernel,
        out_shape=(
            jax.ShapeDtypeStruct((q_total, m2, c_out), jnp.float32),
            jax.ShapeDtypeStruct((m2, c_out), jnp.float32),
            jax.ShapeDtypeStruct((m2, c_out), jnp.int32),
        ),
        grid_spec=pltpu.PrefetchScalarGridSpec(
            num_scalar_prefetch=0,
            grid=grid,
            in_specs=[
                pl.BlockSpec((q_total, tm, k_dim), lambda i: (0, i, 0)),   # patches (true K, 1 K-step)
                pl.BlockSpec((k_dim, c_out), lambda i: (0, 0)),            # weights (resident)
                pl.BlockSpec((1, c_out), lambda i: (0, 0)),                # bias
                pl.BlockSpec((tm, 1), lambda i: (i, 0)),                   # window top-left indices
            ],
            out_specs=[
                pl.BlockSpec((q_total, tm, c_out), lambda i: (0, i, 0)),   # x2 (window-major)
                pl.BlockSpec((tm, c_out), lambda i: (i, 0)),               # pooled max
                pl.BlockSpec((tm, c_out), lambda i: (i, 0)),               # argmax flat indices
            ],
        ),
        compiler_params=pltpu.CompilerParams(
            dimension_semantics=("parallel",),
            vmem_limit_bytes=32 * 1024 * 1024,
        ),
    )(patches, w_mat, bias, base_idx)

    # Layout plumbing back to PyTorch's NCHW.
    x2 = x2_q.reshape(pool, pool, n, ho2, wo2, c_out)          # (dh, dw, n, ph, pw, c)
    x2 = x2.transpose(2, 5, 3, 0, 4, 1).reshape(n, c_out, ho, wo)
    out_encoder = pooled.reshape(n, ho2, wo2, c_out).transpose(0, 3, 1, 2)
    indices = idx.reshape(n, ho2, wo2, c_out).transpose(0, 3, 1, 2)
    return out_encoder, x2, indices


# ----------------------------------------------------------------------------
# Deterministic example inputs + run
# ----------------------------------------------------------------------------
if __name__ == "__main__":
    batch, num_channels, H, W = 2, 4, 16, 16
    num_filters, kernel_h, kernel_w = 64, 5, 5
    stride_conv, pool, stride_pool = 1, 2, 2

    key = jax.random.PRNGKey(0)
    kx, kwt, kb = jax.random.split(key, 3)
    x = jax.random.normal(kx, (batch, num_channels, H, W), jnp.float32)
    conv_w = 0.1 * jax.random.normal(kwt, (num_filters, num_channels, kernel_h, kernel_w),
                                     jnp.float32)
    conv_b = 0.1 * jax.random.normal(kb, (num_filters,), jnp.float32)

    fwd = jax.jit(functools.partial(sdnet_no_bn_encoder_block,
                                    stride_conv=stride_conv, pool=pool, stride_pool=stride_pool))
    out_encoder, x2, indices = fwd(x, conv_w, conv_b)
    out_encoder, x2, indices = jax.block_until_ready((out_encoder, x2, indices))

    # Shape / dtype checks (PyTorch return order: out_encoder, x2, indices).
    assert x2.shape == (batch, num_filters, H, W), x2.shape
    assert out_encoder.shape == (batch, num_filters, H // pool, W // pool), out_encoder.shape
    assert indices.shape == out_encoder.shape and indices.dtype == jnp.int32
    assert bool(jnp.all(jnp.isfinite(x2))) and bool(jnp.all(jnp.isfinite(out_encoder)))
    assert bool(jnp.all(x2 >= 0.0))                                       # ReLU

    # Conv+ReLU correctness vs XLA reference (bf16 operands => loose tolerance).
    ref = lax.conv_general_dilated(
        x, conv_w, window_strides=(stride_conv, stride_conv),
        padding=(((kernel_h - 1) // 2,) * 2, ((kernel_w - 1) // 2,) * 2),
        dimension_numbers=("NCHW", "OIHW", "NCHW"))
    ref_x2 = jnp.maximum(ref + conv_b[None, :, None, None], 0.0)
    assert float(jnp.max(jnp.abs(x2 - ref_x2))) < 0.1

    # Max-pool correctness: pooled values are the window maxima of x2.
    ref_pool = x2.reshape(batch, num_filters, H // pool, pool, W // pool, pool).max(axis=(3, 5))
    assert bool(jnp.allclose(ref_pool, out_encoder))

    # Indices correctness: gathering x2 at the returned flat indices reproduces the pooled values.
    x2_flat = x2.reshape(batch, num_filters, H * W)
    gathered = jnp.take_along_axis(x2_flat, indices.reshape(batch, num_filters, -1), axis=2)
    assert bool(jnp.allclose(gathered.reshape(out_encoder.shape), out_encoder))

    print("KERNEL_OK")
</pallas_src>

<mosaic_0001>
module attributes {stable_mosaic.version = 11 : i64} {
  func.func @kernel(%arg0: i32, %arg1: memref<4x128x100xbf16, #tpu.memory_space<vmem>>, %arg2: memref<100x64xbf16, #tpu.memory_space<vmem>>, %arg3: memref<1x64xf32, #tpu.memory_space<vmem>>, %arg4: memref<128x1xi32, #tpu.memory_space<vmem>>, %arg5: memref<4x128x64xf32, #tpu.memory_space<vmem>>, %arg6: memref<128x64xf32, #tpu.memory_space<vmem>>, %arg7: memref<128x64xi32, #tpu.memory_space<vmem>>) attributes {dimension_semantics = [#tpu.dimension_semantics<parallel>], iteration_bounds = array<i64: 1>, scalar_prefetch = 0 : i64, scratch_operands = 0 : i64, tpu.core_type = #tpu.core_type<tc>, window_params = [{transform_indices = @transform_0, window_bounds = array<i64: 4, 128, 100>}, {pipeline_mode = #tpu.pipeline_mode<synchronous>, transform_indices = @transform_1, window_bounds = array<i64: 100, 64>}, {pipeline_mode = #tpu.pipeline_mode<synchronous>, transform_indices = @transform_2, window_bounds = array<i64: 1, 64>}, {transform_indices = @transform_3, window_bounds = array<i64: 128, 1>}, {transform_indices = @transform_4, window_bounds = array<i64: 4, 128, 64>}, {transform_indices = @transform_5, window_bounds = array<i64: 128, 64>}, {transform_indices = @transform_6, window_bounds = array<i64: 128, 64>}]} {
    %c0 = arith.constant 0 : index
    %c0_0 = arith.constant 0 : index
    %0 = vector.load %arg2[%c0, %c0_0] : memref<100x64xbf16, #tpu.memory_space<vmem>>, vector<100x64xbf16>
    %c0_1 = arith.constant 0 : index
    %c0_2 = arith.constant 0 : index
    %1 = vector.load %arg3[%c0_1, %c0_2] : memref<1x64xf32, #tpu.memory_space<vmem>>, vector<1x64xf32>
    %c0_3 = arith.constant 0 : index
    %c0_4 = arith.constant 0 : index
    %c0_5 = arith.constant 0 : index
    %2 = vector.load %arg1[%c0_3, %c0_4, %c0_5] : memref<4x128x100xbf16, #tpu.memory_space<vmem>>, vector<1x128x100xbf16>
    %3 = vector.shape_cast %2 : vector<1x128x100xbf16> to vector<128x100xbf16>
    %cst = arith.constant dense<0.000000e+00> : vector<128x64xf32>
    %4 = tpu.matmul %3, %0, %cst {dimension_numbers = #tpu.dot_dimension_numbers<[1], [0], [0], [1], [0, 0, 1, 1], [], []>} : vector<128x100xbf16>, vector<100x64xbf16>, vector<128x64xf32> -> vector<128x64xf32>
    %5 = vector.broadcast %1 : vector<1x64xf32> to vector<128x64xf32>
    %6 = arith.addf %4, %5 : vector<128x64xf32>
    %cst_6 = arith.constant 0.000000e+00 : f32
    %7 = vector.broadcast %cst_6 : f32 to vector<128x64xf32>
    %8 = arith.maximumf %6, %7 : vector<128x64xf32>
    %c0_7 = arith.constant 0 : index
    %c0_8 = arith.constant 0 : index
    %c0_9 = arith.constant 0 : index
    %9 = vector.load %arg5[%c0_7, %c0_8, %c0_9] : memref<4x128x64xf32, #tpu.memory_space<vmem>>, vector<1x128x64xf32>
    %10 = vector.shape_cast %9 : vector<1x128x64xf32> to vector<128x64xf32>
    %11 = vector.shape_cast %8 : vector<128x64xf32> to vector<1x128x64xf32>
    tpu.vector_store %arg5[%c0_7, %c0_8, %c0_9], %11 {strides = array<i32>} : memref<4x128x64xf32, #tpu.memory_space<vmem>>, vector<1x128x64xf32>,
    %c0_i32 = arith.constant 0 : i32
    %12 = vector.broadcast %c0_i32 : i32 to vector<128x64xi32>
    %c0_i32_10 = arith.constant 0 : i32
    %13 = vector.broadcast %c0_i32_10 : i32 to vector<128x64xi32>
    %c1 = arith.constant 1 : index
    %c0_11 = arith.constant 0 : index
    %c0_12 = arith.constant 0 : index
    %14 = vector.load %arg1[%c1, %c0_11, %c0_12] : memref<4x128x100xbf16, #tpu.memory_space<vmem>>, vector<1x128x100xbf16>
    %15 = vector.shape_cast %14 : vector<1x128x100xbf16> to vector<128x100xbf16>
    %cst_13 = arith.constant dense<0.000000e+00> : vector<128x64xf32>
    %16 = tpu.matmul %15, %0, %cst_13 {dimension_numbers = #tpu.dot_dimension_numbers<[1], [0], [0], [1], [0, 0, 1, 1], [], []>} : vector<128x100xbf16>, vector<100x64xbf16>, vector<128x64xf32> -> vector<128x64xf32>
    %17 = vector.broadcast %1 : vector<1x64xf32> to vector<128x64xf32>
    %18 = arith.addf %16, %17 : vector<128x64xf32>
    %cst_14 = arith.constant 0.000000e+00 : f32
    %19 = vector.broadcast %cst_14 : f32 to vector<128x64xf32>
    %20 = arith.maximumf %18, %19 : vector<128x64xf32>
    %c1_15 = arith.constant 1 : index
    %c0_16 = arith.constant 0 : index
    %c0_17 = arith.constant 0 : index
    %21 = vector.load %arg5[%c1_15, %c0_16, %c0_17] : memref<4x128x64xf32, #tpu.memory_space<vmem>>, vector<1x128x64xf32>
    %22 = vector.shape_cast %21 : vector<1x128x64xf32> to vector<128x64xf32>
    %23 = vector.shape_cast %20 : vector<128x64xf32> to vector<1x128x64xf32>
    tpu.vector_store %arg5[%c1_15, %c0_16, %c0_17], %23 {strides = array<i32>} : memref<4x128x64xf32, #tpu.memory_space<vmem>>, vector<1x128x64xf32>,
    %24 = arith.cmpf ogt, %20, %8 : vector<128x64xf32>
    %25 = arith.select %24, %20, %8 : vector<128x64xi1>, vector<128x64xf32>
    %c0_i32_18 = arith.constant 0 : i32
    %26 = vector.broadcast %c0_i32_18 : i32 to vector<128x64xi32>
    %27 = arith.select %24, %26, %12 : vector<128x64xi1>, vector<128x64xi32>
    %c1_i32 = arith.constant 1 : i32
    %28 = vector.broadcast %c1_i32 : i32 to vector<128x64xi32>
    %29 = arith.select %24, %28, %13 : vector<128x64xi1>, vector<128x64xi32>
    %c2 = arith.constant 2 : index
    %c0_19 = arith.constant 0 : index
    %c0_20 = arith.constant 0 : index
    %30 = vector.load %arg1[%c2, %c0_19, %c0_20] : memref<4x128x100xbf16, #tpu.memory_space<vmem>>, vector<1x128x100xbf16>
    %31 = vector.shape_cast %30 : vector<1x128x100xbf16> to vector<128x100xbf16>
    %cst_21 = arith.constant dense<0.000000e+00> : vector<128x64xf32>
    %32 = tpu.matmul %31, %0, %cst_21 {dimension_numbers = #tpu.dot_dimension_numbers<[1], [0], [0], [1], [0, 0, 1, 1], [], []>} : vector<128x100xbf16>, vector<100x64xbf16>, vector<128x64xf32> -> vector<128x64xf32>
    %33 = vector.broadcast %1 : vector<1x64xf32> to vector<128x64xf32>
    %34 = arith.addf %32, %33 : vector<128x64xf32>
    %cst_22 = arith.constant 0.000000e+00 : f32
    %35 = vector.broadcast %cst_22 : f32 to vector<128x64xf32>
    %36 = arith.maximumf %34, %35 : vector<128x64xf32>
    %c2_23 = arith.constant 2 : index
    %c0_24 = arith.constant 0 : index
    %c0_25 = arith.constant 0 : index
    %37 = vector.load %arg5[%c2_23, %c0_24, %c0_25] : memref<4x128x64xf32, #tpu.memory_space<vmem>>, vector<1x128x64xf32>
    %38 = vector.shape_cast %37 : vector<1x128x64xf32> to vector<128x64xf32>
    %39 = vector.shape_cast %36 : vector<128x64xf32> to vector<1x128x64xf32>
    tpu.vector_store %arg5[%c2_23, %c0_24, %c0_25], %39 {strides = array<i32>} : memref<4x128x64xf32, #tpu.memory_space<vmem>>, vector<1x128x64xf32>,
    %40 = arith.cmpf ogt, %36, %25 : vector<128x64xf32>
    %41 = arith.select %40, %36, %25 : vector<128x64xi1>, vector<128x64xf32>
    %c1_i32_26 = arith.constant 1 : i32
    %42 = vector.broadcast %c1_i32_26 : i32 to vector<128x64xi32>
    %43 = arith.select %40, %42, %27 : vector<128x64xi1>, vector<128x64xi32>
    %c0_i32_27 = arith.constant 0 : i32
    %44 = vector.broadcast %c0_i32_27 : i32 to vector<128x64xi32>
    %45 = arith.select %40, %44, %29 : vector<128x64xi1>, vector<128x64xi32>
    %c3 = arith.constant 3 : index
    %c0_28 = arith.constant 0 : index
    %c0_29 = arith.constant 0 : index
    %46 = vector.load %arg1[%c3, %c0_28, %c0_29] : memref<4x128x100xbf16, #tpu.memory_space<vmem>>, vector<1x128x100xbf16>
    %47 = vector.shape_cast %46 : vector<1x128x100xbf16> to vector<128x100xbf16>
    %cst_30 = arith.constant dense<0.000000e+00> : vector<128x64xf32>
    %48 = tpu.matmul %47, %0, %cst_30 {dimension_numbers = #tpu.dot_dimension_numbers<[1], [0], [0], [1], [0, 0, 1, 1], [], []>} : vector<128x100xbf16>, vector<100x64xbf16>, vector<128x64xf32> -> vector<128x64xf32>
    %49 = vector.broadcast %1 : vector<1x64xf32> to vector<128x64xf32>
    %50 = arith.addf %48, %49 : vector<128x64xf32>
    %cst_31 = arith.constant 0.000000e+00 : f32
    %51 = vector.broadcast %cst_31 : f32 to vector<128x64xf32>
    %52 = arith.maximumf %50, %51 : vector<128x64xf32>
    %c3_32 = arith.constant 3 : index
    %c0_33 = arith.constant 0 : index
    %c0_34 = arith.constant 0 : index
    %53 = vector.load %arg5[%c3_32, %c0_33, %c0_34] : memref<4x128x64xf32, #tpu.memory_space<vmem>>, vector<1x128x64xf32>
    %54 = vector.shape_cast %53 : vector<1x128x64xf32> to vector<128x64xf32>
    %55 = vector.shape_cast %52 : vector<128x64xf32> to vector<1x128x64xf32>
    tpu.vector_store %arg5[%c3_32, %c0_33, %c0_34], %55 {strides = array<i32>} : memref<4x128x64xf32, #tpu.memory_space<vmem>>, vector<1x128x64xf32>,
    %56 = arith.cmpf ogt, %52, %41 : vector<128x64xf32>
    %57 = arith.select %56, %52, %41 : vector<128x64xi1>, vector<128x64xf32>
    %c1_i32_35 = arith.constant 1 : i32
    %58 = vector.broadcast %c1_i32_35 : i32 to vector<128x64xi32>
    %59 = arith.select %56, %58, %43 : vector<128x64xi1>, vector<128x64xi32>
    %c1_i32_36 = arith.constant 1 : i32
    %60 = vector.broadcast %c1_i32_36 : i32 to vector<128x64xi32>
    %61 = arith.select %56, %60, %45 : vector<128x64xi1>, vector<128x64xi32>
    %c0_37 = arith.constant 0 : index
    %c0_38 = arith.constant 0 : index
    %62 = vector.load %arg6[%c0_37, %c0_38] : memref<128x64xf32, #tpu.memory_space<vmem>>, vector<128x64xf32>
    tpu.vector_store %arg6[%c0_37, %c0_38], %57 {strides = array<i32>} : memref<128x64xf32, #tpu.memory_space<vmem>>, vector<128x64xf32>,
    %c0_39 = arith.constant 0 : index
    %c0_40 = arith.constant 0 : index
    %63 = vector.load %arg4[%c0_39, %c0_40] : memref<128x1xi32, #tpu.memory_space<vmem>>, vector<128x1xi32>
    %c16_i32 = arith.constant 16 : i32
    %64 = vector.broadcast %c16_i32 : i32 to vector<128x64xi32>
    %65 = arith.muli %59, %64 : vector<128x64xi32>
    %66 = vector.broadcast %63 : vector<128x1xi32> to vector<128x64xi32>
    %67 = arith.addi %66, %65 : vector<128x64xi32>
    %68 = arith.addi %67, %61 : vector<128x64xi32>
    %c0_41 = arith.constant 0 : index
    %c0_42 = arith.constant 0 : index
    %69 = vector.load %arg7[%c0_41, %c0_42] : memref<128x64xi32, #tpu.memory_space<vmem>>, vector<128x64xi32>
    tpu.vector_store %arg7[%c0_41, %c0_42], %68 {strides = array<i32>} : memref<128x64xi32, #tpu.memory_space<vmem>>, vector<128x64xi32>,
    return
  }
  func.func @transform_0(%arg0: i32) -> (i32, i32, i32) {
    %c0_i32 = arith.constant 0 : i32
    %c0_i32_0 = arith.constant 0 : i32
    %c0_i32_1 = arith.constant 0 : i32
    return %c0_i32, %arg0, %c0_i32_0 : i32, i32, i32
  }
  func.func @transform_1(%arg0: i32) -> (i32, i32) {
    %c0_i32 = arith.constant 0 : i32
    %c0_i32_0 = arith.constant 0 : i32
    %c0_i32_1 = arith.constant 0 : i32
    return %c0_i32, %c0_i32_0 : i32, i32
  }
  func.func @transform_2(%arg0: i32) -> (i32, i32) {
    %c0_i32 = arith.constant 0 : i32
    %c0_i32_0 = arith.constant 0 : i32
    %c0_i32_1 = arith.constant 0 : i32
    return %c0_i32, %c0_i32_0 : i32, i32
  }
  func.func @transform_3(%arg0: i32) -> (i32, i32) {
    %c0_i32 = arith.constant 0 : i32
    %c0_i32_0 = arith.constant 0 : i32
    return %arg0, %c0_i32 : i32, i32
  }
  func.func @transform_4(%arg0: i32) -> (i32, i32, i32) {
    %c0_i32 = arith.constant 0 : i32
    %c0_i32_0 = arith.constant 0 : i32
    %c0_i32_1 = arith.constant 0 : i32
    return %c0_i32, %arg0, %c0_i32_0 : i32, i32, i32
  }
  func.func @transform_5(%arg0: i32) -> (i32, i32) {
    %c0_i32 = arith.constant 0 : i32
    %c0_i32_0 = arith.constant 0 : i32
    return %arg0, %c0_i32 : i32, i32
  }
  func.func @transform_6(%arg0: i32) -> (i32, i32) {
    %c0_i32 = arith.constant 0 : i32
    %c0_i32_0 = arith.constant 0 : i32
    return %arg0, %c0_i32 : i32, i32
  }
}

</mosaic_0001>

<bundles_post_ra>
// kernel: tile.6
= control target key start
LH: loop header
LB: loop body
LE: loop exit
PB: predicated region body
PF: predicated region fallthrough
CT: control target
= control target key end

     0   :  { %s22_s0 = inlined_call_operand.vmem [shape: s32[64], index: 0, kind: input, shape index: {}]   ;;  %s23_s1 = inlined_call_operand.vmem [shape: s32[2,64], index: 1, kind: output, shape index: {}]  }
   0x1   :  { %v4_v0 = vld [vmem:[%s22_s0] ss:$0 sm:$0xff] }
   0x2   :  { %5 = vst [vmem:[%s23_s1] sm:$0x3] %v4_v0 }

// kernel: tile.0
= control target key start
LH: loop header
LB: loop body
LE: loop exit
PB: predicated region body
PF: predicated region fallthrough
CT: control target
= control target key end

     0   :  { %s706_s8 = smov 125   ;;  %s707_s9 = smov 126   ;;  %vm7_vm0 = vcmask 7168   ;;  %s1293_s0 = inlined_call_operand.vmem [shape: s32[2,64], index: 0, kind: input, shape index: {}]   ;;  %s1294_s1 = inlined_call_operand.vmem [shape: s32[128,1], index: 1, kind: output, shape index: {}]  }
   0x1   :  { %v4_v0 = vld [vmem:[%s1293_s0] sm:$0x3]  ;;  %s705_s0 = smov 127   ;;  %s708_s10 = smov 124  }
   0x2   :  { %5 = vst [vmem:[#allocation0] sm:$0x3] %v4_v0  ;;  %s709_s11 = smov 123   ;;  %s710_s12 = smov 122  }
   0x3   :  { %s711_s13 = smov 121   ;;  %s712_s14 = smov 120  }
   0x4   :  { %s713_s15 = smov 119   ;;  %s714_s16 = smov 118  }
   0x5   :  { %s715_s17 = smov 117   ;;  %s716_s18 = smov 116  }
   0x6   :  { %s717_s19 = smov 115   ;;  %s718_s20 = smov 114  }
   0x7   :  { %s719_s21 = smov 113   ;;  %s720_s22 = smov 112  }
   0x8   :  { %s721_s23 = smov 111   ;;  %s722_s24 = smov 110  }
   0x9   :  { %v11_v1 = vld [vmem:[#allocation0] sm:$0x3]   ;;  %s723_s25 = smov 109   ;;  %s724_s26 = smov 108  }
   0xa   :  { %v27_v2 = vld [vmem:[#allocation0] sm:$0x3]   ;;  %12 = vrot.lane.b32.xlu0 %v11_v1, %s705_s0  ;;  %s725_s27 = smov 107   ;;  %s726_s28 = smov 106  }
   0xb   :  { %28 = vrot.lane.b32.xlu1 %v27_v2, %s706_s8  ;;  %v19_v3 = vld [vmem:[#allocation0] sm:$0x3]   ;;  %s727_s29 = smov 105   ;;  %s728_s30 = smov 104  }
   0xc   :  { %v35_v4 = vld [vmem:[#allocation0] sm:$0x3]   ;;  %s729_s2 = smov 103   ;;  %s730_s3 = smov 102  }
   0xd   :  { %v43_v5 = vld [vmem:[#allocation0] sm:$0x3]   ;;  %s731_s4 = smov 101   ;;  %s732_s5 = smov 100  }
   0xe   :  { %20 = vrot.lane.b32.xlu0 %v19_v3, %s707_s9  ;;  %v51_v6 = vld [vmem:[#allocation0] sm:$0x3]   ;;  %s733_s6 = smov 99   ;;  %s734_s7 = smov 98  }
   0xf   :  { %36 = vrot.lane.b32.xlu1 %v35_v4, %s708_s10  ;;  %v59_v7 = vld [vmem:[#allocation0] sm:$0x3]   ;;  %s735_s0 = smov 97   ;;  %s736_s8 = smov 96  }
  0x10   :  { %v67_v8 = vld [vmem:[#allocation0] sm:$0x3]   ;;  %s737_s9 = smov 95   ;;  %s738_s10 = smov 94  }
  0x11   :  { %v75_v9 = vld [vmem:[#allocation0] sm:$0x3]  }
  0x12   :  { %44 = vrot.lane.b32.xlu0 %v43_v5, %s709_s11  ;;  %v83_v10 = vld [vmem:[#allocation0] sm:$0x3]   ;;  %s739_s11 = smov 93  }
  0x13   :  { %52 = vrot.lane.b32.xlu1 %v51_v6, %s710_s12  ;;  %v91_v11 = vld [vmem:[#allocation0] sm:$0x3]   ;;  %s740_s12 = smov 92  }
  0x14   :  { %v99_v12 = vld [vmem:[#allocation0] sm:$0x3]  }
  0x15   :  { %v107_v13 = vld [vmem:[#allocation0] sm:$0x3]  }
  0x16   :  { %60 = vrot.lane.b32.xlu0 %v59_v7, %s711_s13  ;;  %v115_v14 = vld [vmem:[#allocation0] sm:$0x3]   ;;  %s741_s13 = smov 91  }
  0x17   :  { %68 = vrot.lane.b32.xlu1 %v67_v8, %s712_s14  ;;  %v123_v15 = vld [vmem:[#allocation0] sm:$0x3]   ;;  %s742_s14 = smov 90  }
  0x18   :  { %v131_v16 = vld [vmem:[#allocation0] sm:$0x3]  }
  0x19   :  { %v139_v17 = vld [vmem:[#allocation0] sm:$0x3]  }
  0x1a   :  { %76 = vrot.lane.b32.xlu0 %v75_v9, %s713_s15  ;;  %v147_v18 = vld [vmem:[#allocation0] sm:$0x3]   ;;  %s743_s15 = smov 89  }
  0x1b   :  { %84 = vrot.lane.b32.xlu1 %v83_v10, %s714_s16  ;;  %v155_v19 = vld [vmem:[#allocation0] sm:$0x3]   ;;  %s744_s16 = smov 88  }
  0x1c   :  { %v163_v20 = vld [vmem:[#allocation0] sm:$0x3]  }
  0x1d   :  { %v171_v21 = vld [vmem:[#allocation0] sm:$0x3]  }
  0x1e   :  { %92 = vrot.lane.b32.xlu0 %v91_v11, %s715_s17  ;;  %v179_v22 = vld [vmem:[#allocation0] sm:$0x3]   ;;  %s745_s17 = smov 87  }
  0x1f   :  { %100 = vrot.lane.b32.xlu1 %v99_v12, %s716_s18  ;;  %v187_v23 = vld [vmem:[#allocation0] sm:$0x3]   ;;  %s746_s18 = smov 86  }
  0x20   :  { %v195_v24 = vld [vmem:[#allocation0] sm:$0x3]  }
  0x21   :  { %v203_v25 = vld [vmem:[#allocation0] sm:$0x3]  }
  0x22   :  { %108 = vrot.lane.b32.xlu0 %v107_v13, %s717_s19  ;;  %v211_v26 = vld [vmem:[#allocation0] sm:$0x3]   ;;  %s747_s19 = smov 85  }
  0x23   :  { %116 = vrot.lane.b32.xlu1 %v115_v14, %s718_s20  ;;  %v219_v27 = vld [vmem:[#allocation0] sm:$0x3]   ;;  %s748_s20 = smov 84  }
  0x24   :  { %v227_v28 = vld [vmem:[#allocation0] sm:$0x3]  }
  0x25   :  { %v235_v29 = vld [vmem:[#allocation0] sm:$0x3]  }
  0x26   :  { %124 = vrot.lane.b32.xlu0 %v123_v15, %s719_s21  ;;  %v243_v30 = vld [vmem:[#allocation0] sm:$0x3]   ;;  %s749_s21 = smov 83  }
  0x27   :  { %132 = vrot.lane.b32.xlu1 %v131_v16, %s720_s22  ;;  %v251_v31 = vld [vmem:[#allocation0] sm:$0x3]   ;;  %s750_s22 = smov 82  }
  0x28   :  { %v259_v32 = vld [vmem:[#allocation0] sm:$0x3]  }
  0x29   :  { %v267_v33 = vld [vmem:[#allocation0] sm:$0x3]  }
  0x2a   :  { %140 = vrot.lane.b32.xlu0 %v139_v17, %s721_s23  ;;  %v275_v34 = vld [vmem:[#allocation0] sm:$0x3]   ;;  %s751_s23 = smov 81  }
  0x2b   :  { %148 = vrot.lane.b32.xlu1 %v147_v18, %s722_s24  ;;  %v283_v35 = vld [vmem:[#allocation0] sm:$0x3]   ;;  %s752_s24 = smov 80  }
  0x2c   :  { %v291_v36 = vld [vmem:[#allocation0] sm:$0x3]  }
  0x2d   :  { %v299_v37 = vld [vmem:[#allocation0] sm:$0x3]  }
  0x2e   :  { %156 = vrot.lane.b32.xlu0 %v155_v19, %s723_s25  ;;  %v307_v38 = vld [vmem:[#allocation0] sm:$0x3]   ;;  %s753_s25 = smov 79  }
  0x2f   :  { %164 = vrot.lane.b32.xlu1 %v163_v20, %s724_s26  ;;  %v315_v39 = vld [vmem:[#allocation0] sm:$0x3]   ;;  %s754_s26 = smov 78  }
  0x30   :  { %v323_v40 = vld [vmem:[#allocation0] sm:$0x3]  }
  0x31   :  { %v331_v41 = vld [vmem:[#allocation0] sm:$0x3]  }
  0x32   :  { %172 = vrot.lane.b32.xlu0 %v171_v21, %s725_s27  ;;  %v339_v42 = vld [vmem:[#allocation0] sm:$0x3]   ;;  %s755_s27 = smov 77  }
  0x33   :  { %180 = vrot.lane.b32.xlu1 %v179_v22, %s726_s28  ;;  %v347_v43 = vld [vmem:[#allocation0] sm:$0x3]   ;;  %s756_s28 = smov 76  }
  0x34   :  { %v355_v44 = vld [vmem:[#allocation0] sm:$0x3]  }
  0x35   :  { %v363_v45 = vld [vmem:[#allocation0] sm:$0x3]  }
  0x36   :  { %188 = vrot.lane.b32.xlu0 %v187_v23, %s727_s29  ;;  %v371_v46 = vld [vmem:[#allocation0] sm:$0x3]   ;;  %s757_s29 = smov 75  }
  0x37   :  { %196 = vrot.lane.b32.xlu1 %v195_v24, %s728_s30  ;;  %v379_v47 = vld [vmem:[#allocation0] sm:$0x3]   ;;  %s758_s30 = smov 74  }
  0x38   :  { %v387_v48 = vld [vmem:[#allocation0] sm:$0x3]  }
  0x39   :  { %v395_v49 = vld [vmem:[#allocation0] sm:$0x3]  }
  0x3a   :  { %204 = vrot.lane.b32.xlu0 %v203_v25, %s729_s2  ;;  %v403_v50 = vld [vmem:[#allocation0] sm:$0x3]   ;;  %s759_s2 = smov 73  }
  0x3b   :  { %212 = vrot.lane.b32.xlu1 %v211_v26, %s730_s3  ;;  %v411_v51 = vld [vmem:[#allocation0] sm:$0x3]   ;;  %s760_s3 = smov 72  }
  0x3c   :  { %v419_v52 = vld [vmem:[#allocation0] sm:$0x3]  }
  0x3d   :  { %v427_v53 = vld [vmem:[#allocation0] sm:$0x3]  }
  0x3e   :  { %220 = vrot.lane.b32.xlu0 %v219_v27, %s731_s4  ;;  %v435_v54 = vld [vmem:[#allocation0] sm:$0x3]  }
  0x3f   :  { %228 = vrot.lane.b32.xlu1 %v227_v28, %s732_s5  ;;  %v443_v55 = vld [vmem:[#allocation0] sm:$0x3]  }
  0x40   :  { %v451_v56 = vld [vmem:[#allocation0] sm:$0x3]  }
  0x41   :  { %v459_v57 = vld [vmem:[#allocation0] sm:$0x3]  }
  0x42   :  { %236 = vrot.lane.b32.xlu0 %v235_v29, %s733_s6  ;;  %v467_v58 = vld [vmem:[#allocation0] sm:$0x3]  }
  0x43   :  { %244 = vrot.lane.b32.xlu1 %v243_v30, %s734_s7  ;;  %v6_v59 = vld [vmem:[#allocation0] sm:$0x3]  }
  0x44   :  { %8 = vst.msk [vmem:[%s1294_s1] sm:$0x1] %vm7_vm0, %v6_v59   ;;  %515 = vst.msk [vmem:[%s1294_s1 + $0x3f] sm:$0x2] %vm7_vm0, %v6_v59   ;;  %v475_v60 = vld [vmem:[#allocation0] sm:$0x3]  }
  0x45   :  { %v483_v61 = vld [vmem:[#allocation0] sm:$0x3]  }
  0x46   :  { %252 = vrot.lane.b32.xlu0 %v251_v31, %s735_s0  ;;  %s761_s0 = smov 71   ;;  %v491_v0 = vld [vmem:[#allocation0] sm:$0x3]  }
  0x47   :  { %260 = vrot.lane.b32.xlu1 %v259_v32, %s736_s8  ;;  %s762_s8 = smov 70   ;;  %v499_v1 = vld [vmem:[#allocation0] sm:$0x3]  }
  0x48   :  { %v507_v4 = vld [vmem:[#allocation0] sm:$0x3]  }
  0x4a   :  { %268 = vrot.lane.b32.xlu0 %v267_v33, %s737_s9 }
  0x4b   :  { %276 = vrot.lane.b32.xlu1 %v275_v34, %s738_s10 }
  0x4e   :  { %284 = vrot.lane.b32.xlu0 %v283_v35, %s739_s11 }
  0x4f   :  { %292 = vrot.lane.b32.xlu1 %v291_v36, %s740_s12 }
  0x52   :  { %300 = vrot.lane.b32.xlu0 %v299_v37, %s741_s13 }
  0x53   :  { %308 = vrot.lane.b32.xlu1 %v307_v38, %s742_s14 }
  0x56   :  { %316 = vrot.lane.b32.xlu0 %v315_v39, %s743_s15 }
  0x57   :  { %324 = vrot.lane.b32.xlu1 %v323_v40, %s744_s16 }
  0x5a   :  { %332 = vrot.lane.b32.xlu0 %v331_v41, %s745_s17  ;;  %s763_s17 = smov 69  }
  0x5b   :  { %340 = vrot.lane.b32.xlu1 %v339_v42, %s746_s18  ;;  %s764_s18 = smov 68  }
  0x5e   :  { %348 = vrot.lane.b32.xlu0 %v347_v43, %s747_s19 }
  0x5f   :  { %356 = vrot.lane.b32.xlu1 %v355_v44, %s748_s20 }
  0x62   :  { %364 = vrot.lane.b32.xlu0 %v363_v45, %s749_s21 }
  0x63   :  { %372 = vrot.lane.b32.xlu1 %v371_v46, %s750_s22 }
  0x66   :  { %380 = vrot.lane.b32.xlu0 %v379_v47, %s751_s23 }
  0x67   :  { %388 = vrot.lane.b32.xlu1 %v387_v48, %s752_s24 }
  0x6a   :  { %396 = vrot.lane.b32.xlu0 %v395_v49, %s753_s25 }
  0x6b   :  { %404 = vrot.lane.b32.xlu1 %v403_v50, %s754_s26 }
  0x6e   :  { %412 = vrot.lane.b32.xlu0 %v411_v51, %s755_s27  ;;  %s765_s27 = smov 67  }
  0x6f   :  { %420 = vrot.lane.b32.xlu1 %v419_v52, %s756_s28  ;;  %s766_s28 = smov 66  }
  0x72   :  { %428 = vrot.lane.b32.xlu0 %v427_v53, %s757_s29 }
  0x73   :  { %436 = vrot.lane.b32.xlu1 %v435_v54, %s758_s30 }
  0x76   :  { %444 = vrot.lane.b32.xlu0 %v443_v55, %s759_s2 }
  0x77   :  { %452 = vrot.lane.b32.xlu1 %v451_v56, %s760_s3 }
  0x7a   :  { %460 = vrot.lane.b32.xlu0 %v459_v57, %s761_s0  ;;  %s767_s0 = smov 65  }
  0x7b   :  { %468 = vrot.lane.b32.xlu1 %v467_v58, %s762_s8 }
  0x7c   :  { %v13_v62 = vpop.permute.xlu0 %12  }
  0x7d   :  { %v29_v63 = vpop.permute.xlu1 %28   ;;  %516 = vst.msk [vmem:[%s1294_s1 + $0x1] sm:$0x1] %vm7_vm0, %v13_v62   ;;  %517 = vst.msk [vmem:[%s1294_s1 + $0x40] sm:$0x2] %vm7_vm0, %v13_v62  }
  0x7e   :  { %520 = vst.msk [vmem:[%s1294_s1 + $0x3] sm:$0x1] %vm7_vm0, %v29_v63   ;;  %521 = vst.msk [vmem:[%s1294_s1 + $0x42] sm:$0x2] %vm7_vm0, %v29_v63   ;;  %476 = vrot.lane.b32.xlu0 %v475_v60, %s763_s17 }
  0x7f   :  { %484 = vrot.lane.b32.xlu1 %v483_v61, %s764_s18 }
  0x80   :  { %v21_v2 = vpop.permute.xlu0 %20  }
  0x81   :  { %v37_v3 = vpop.permute.xlu1 %36   ;;  %518 = vst.msk [vmem:[%s1294_s1 + $0x2] sm:$0x1] %vm7_vm0, %v21_v2   ;;  %519 = vst.msk [vmem:[%s1294_s1 + $0x41] sm:$0x2] %vm7_vm0, %v21_v2  }
  0x82   :  { %522 = vst.msk [vmem:[%s1294_s1 + $0x4] sm:$0x1] %vm7_vm0, %v37_v3   ;;  %523 = vst.msk [vmem:[%s1294_s1 + $0x43] sm:$0x2] %vm7_vm0, %v37_v3   ;;  %492 = vrot.lane.b32.xlu0 %v491_v0, %s765_s27 }
  0x83   :  { %500 = vrot.lane.b32.xlu1 %v499_v1, %s766_s28 }
  0x84   :  { %v45_v5 = vpop.permute.xlu0 %44  }
  0x85   :  { %v53_v6 = vpop.permute.xlu1 %52   ;;  %524 = vst.msk [vmem:[%s1294_s1 + $0x5] sm:$0x1] %vm7_vm0, %v45_v5   ;;  %525 = vst.msk [vmem:[%s1294_s1 + $0x44] sm:$0x2] %vm7_vm0, %v45_v5  }
  0x86   :  { %526 = vst.msk [vmem:[%s1294_s1 + $0x6] sm:$0x1] %vm7_vm0, %v53_v6   ;;  %527 = vst.msk [vmem:[%s1294_s1 + $0x45] sm:$0x2] %vm7_vm0, %v53_v6   ;;  %508 = vrot.lane.b32.xlu0 %v507_v4, %s767_s0 }
  0x88   :  { %v61_v7 = vpop.permute.xlu0 %60  }
  0x89   :  { %v69_v8 = vpop.permute.xlu1 %68   ;;  %528 = vst.msk [vmem:[%s1294_s1 + $0x7] sm:$0x1] %vm7_vm0, %v61_v7   ;;  %529 = vst.msk [vmem:[%s1294_s1 + $0x46] sm:$0x2] %vm7_vm0, %v61_v7  }
  0x8a   :  { %530 = vst.msk [vmem:[%s1294_s1 + $0x8] sm:$0x1] %vm7_vm0, %v69_v8   ;;  %531 = vst.msk [vmem:[%s1294_s1 + $0x47] sm:$0x2] %vm7_vm0, %v69_v8  }
  0x8c   :  { %v77_v9 = vpop.permute.xlu0 %76  }
  0x8d   :  { %v85_v10 = vpop.permute.xlu1 %84   ;;  %532 = vst.msk [vmem:[%s1294_s1 + $0x9] sm:$0x1] %vm7_vm0, %v77_v9   ;;  %533 = vst.msk [vmem:[%s1294_s1 + $0x48] sm:$0x2] %vm7_vm0, %v77_v9  }
  0x8e   :  { %534 = vst.msk [vmem:[%s1294_s1 + $0xa] sm:$0x1] %vm7_vm0, %v85_v10   ;;  %535 = vst.msk [vmem:[%s1294_s1 + $0x49] sm:$0x2] %vm7_vm0, %v85_v10  }
  0x90   :  { %v93_v11 = vpop.permute.xlu0 %92  }
  0x91   :  { %v101_v12 = vpop.permute.xlu1 %100   ;;  %536 = vst.msk [vmem:[%s1294_s1 + $0xb] sm:$0x1] %vm7_vm0, %v93_v11   ;;  %537 = vst.msk [vmem:[%s1294_s1 + $0x4a] sm:$0x2] %vm7_vm0, %v93_v11  }
  0x92   :  { %538 = vst.msk [vmem:[%s1294_s1 + $0xc] sm:$0x1] %vm7_vm0, %v101_v12   ;;  %539 = vst.msk [vmem:[%s1294_s1 + $0x4b] sm:$0x2] %vm7_vm0, %v101_v12  }
  0x94   :  { %v109_v13 = vpop.permute.xlu0 %108  }
  0x95   :  { %v117_v14 = vpop.permute.xlu1 %116   ;;  %540 = vst.msk [vmem:[%s1294_s1 + $0xd] sm:$0x1] %vm7_vm0, %v109_v13   ;;  %541 = vst.msk [vmem:[%s1294_s1 + $0x4c] sm:$0x2] %vm7_vm0, %v109_v13  }
  0x96   :  { %542 = vst.msk [vmem:[%s1294_s1 + $0xe] sm:$0x1] %vm7_vm0, %v117_v14   ;;  %543 = vst.msk [vmem:[%s1294_s1 + $0x4d] sm:$0x2] %vm7_vm0, %v117_v14  }
  0x98   :  { %v125_v15 = vpop.permute.xlu0 %124  }
  0x99   :  { %v133_v16 = vpop.permute.xlu1 %132   ;;  %544 = vst.msk [vmem:[%s1294_s1 + $0xf] sm:$0x1] %vm7_vm0, %v125_v15   ;;  %545 = vst.msk [vmem:[%s1294_s1 + $0x4e] sm:$0x2] %vm7_vm0, %v125_v15  }
  0x9a   :  { %546 = vst.msk [vmem:[%s1294_s1 + $0x10] sm:$0x1] %vm7_vm0, %v133_v16   ;;  %547 = vst.msk [vmem:[%s1294_s1 + $0x4f] sm:$0x2] %vm7_vm0, %v133_v16  }
  0x9c   :  { %v141_v17 = vpop.permute.xlu0 %140  }
  0x9d   :  { %v149_v18 = vpop.permute.xlu1 %148   ;;  %548 = vst.msk [vmem:[%s1294_s1 + $0x11] sm:$0x1] %vm7_vm0, %v141_v17   ;;  %549 = vst.msk [vmem:[%s1294_s1 + $0x50] sm:$0x2] %vm7_vm0, %v141_v17  }
  0x9e   :  { %550 = vst.msk [vmem:[%s1294_s1 + $0x12] sm:$0x1] %vm7_vm0, %v149_v18   ;;  %551 = vst.msk [vmem:[%s1294_s1 + $0x51] sm:$0x2] %vm7_vm0, %v149_v18  }
  0xa0   :  { %v157_v19 = vpop.permute.xlu0 %156  }
  0xa1   :  { %v165_v20 = vpop.permute.xlu1 %164   ;;  %552 = vst.msk [vmem:[%s1294_s1 + $0x13] sm:$0x1] %vm7_vm0, %v157_v19   ;;  %553 = vst.msk [vmem:[%s1294_s1 + $0x52] sm:$0x2] %vm7_vm0, %v157_v19  }
  0xa2   :  { %554 = vst.msk [vmem:[%s1294_s1 + $0x14] sm:$0x1] %vm7_vm0, %v165_v20   ;;  %555 = vst.msk [vmem:[%s1294_s1 + $0x53] sm:$0x2] %vm7_vm0, %v165_v20  }
  0xa4   :  { %v173_v21 = vpop.permute.xlu0 %172  }
  0xa5   :  { %v181_v22 = vpop.permute.xlu1 %180   ;;  %556 = vst.msk [vmem:[%s1294_s1 + $0x15] sm:$0x1] %vm7_vm0, %v173_v21   ;;  %557 = vst.msk [vmem:[%s1294_s1 + $0x54] sm:$0x2] %vm7_vm0, %v173_v21  }
  0xa6   :  { %558 = vst.msk [vmem:[%s1294_s1 + $0x16] sm:$0x1] %vm7_vm0, %v181_v22   ;;  %559 = vst.msk [vmem:[%s1294_s1 + $0x55] sm:$0x2] %vm7_vm0, %v181_v22  }
  0xa8   :  { %v189_v23 = vpop.permute.xlu0 %188  }
  0xa9   :  { %v197_v24 = vpop.permute.xlu1 %196   ;;  %560 = vst.msk [vmem:[%s1294_s1 + $0x17] sm:$0x1] %vm7_vm0, %v189_v23   ;;  %561 = vst.msk [vmem:[%s1294_s1 + $0x56] sm:$0x2] %vm7_vm0, %v189_v23  }
  0xaa   :  { %562 = vst.msk [vmem:[%s1294_s1 + $0x18] sm:$0x1] %vm7_vm0, %v197_v24   ;;  %563 = vst.msk [vmem:[%s1294_s1 + $0x57] sm:$0x2] %vm7_vm0, %v197_v24  }
  0xac   :  { %v205_v25 = vpop.permute.xlu0 %204  }
  0xad   :  { %v213_v26 = vpop.permute.xlu1 %212   ;;  %564 = vst.msk [vmem:[%s1294_s1 + $0x19] sm:$0x1] %vm7_vm0, %v205_v25   ;;  %565 = vst.msk [vmem:[%s1294_s1 + $0x58] sm:$0x2] %vm7_vm0, %v205_v25  }
  0xae   :  { %566 = vst.msk [vmem:[%s1294_s1 + $0x1a] sm:$0x1] %vm7_vm0, %v213_v26   ;;  %567 = vst.msk [vmem:[%s1294_s1 + $0x59] sm:$0x2] %vm7_vm0, %v213_v26  }
  0xb0   :  { %v221_v27 = vpop.permute.xlu0 %220  }
  0xb1   :  { %v229_v28 = vpop.permute.xlu1 %228   ;;  %568 = vst.msk [vmem:[%s1294_s1 + $0x1b] sm:$0x1] %vm7_vm0, %v221_v27   ;;  %569 = vst.msk [vmem:[%s1294_s1 + $0x5a] sm:$0x2] %vm7_vm0, %v221_v27  }
  0xb2   :  { %570 = vst.msk [vmem:[%s1294_s1 + $0x1c] sm:$0x1] %vm7_vm0, %v229_v28   ;;  %571 = vst.msk [vmem:[%s1294_s1 + $0x5b] sm:$0x2] %vm7_vm0, %v229_v28  }
  0xb4   :  { %v237_v29 = vpop.permute.xlu0 %236  }
  0xb5   :  { %v245_v30 = vpop.permute.xlu1 %244   ;;  %572 = vst.msk [vmem:[%s1294_s1 + $0x1d] sm:$0x1] %vm7_vm0, %v237_v29   ;;  %573 = vst.msk [vmem:[%s1294_s1 + $0x5c] sm:$0x2] %vm7_vm0, %v237_v29  }
  0xb6   :  { %574 = vst.msk [vmem:[%s1294_s1 + $0x1e] sm:$0x1] %vm7_vm0, %v245_v30   ;;  %575 = vst.msk [vmem:[%s1294_s1 + $0x5d] sm:$0x2] %vm7_vm0, %v245_v30  }
  0xb8   :  { %v253_v31 = vpop.permute.xlu0 %252  }
  0xb9   :  { %v261_v32 = vpop.permute.xlu1 %260   ;;  %576 = vst.msk [vmem:[%s1294_s1 + $0x1f] sm:$0x1] %vm7_vm0, %v253_v31   ;;  %577 = vst.msk [vmem:[%s1294_s1 + $0x5e] sm:$0x2] %vm7_vm0, %v253_v31  }
  0xba   :  { %578 = vst.msk [vmem:[%s1294_s1 + $0x20] sm:$0x1] %vm7_vm0, %v261_v32   ;;  %579 = vst.msk [vmem:[%s1294_s1 + $0x5f] sm:$0x2] %vm7_vm0, %v261_v32  }
  0xbc   :  { %v269_v33 = vpop.permute.xlu0 %268  }
  0xbd   :  { %v277_v34 = vpop.permute.xlu1 %276   ;;  %580 = vst.msk [vmem:[%s1294_s1 + $0x21] sm:$0x1] %vm7_vm0, %v269_v33   ;;  %581 = vst.msk [vmem:[%s1294_s1 + $0x60] sm:$0x2] %vm7_vm0, %v269_v33  }
  0xbe   :  { %582 = vst.msk [vmem:[%s1294_s1 + $0x22] sm:$0x1] %vm7_vm0, %v277_v34   ;;  %583 = vst.msk [vmem:[%s1294_s1 + $0x61] sm:$0x2] %vm7_vm0, %v277_v34  }
  0xc0   :  { %v285_v35 = vpop.permute.xlu0 %284  }
  0xc1   :  { %v293_v36 = vpop.permute.xlu1 %292   ;;  %584 = vst.msk [vmem:[%s1294_s1 + $0x23] sm:$0x1] %vm7_vm0, %v285_v35   ;;  %585 = vst.msk [vmem:[%s1294_s1 + $0x62] sm:$0x2] %vm7_vm0, %v285_v35  }
  0xc2   :  { %586 = vst.msk [vmem:[%s1294_s1 + $0x24] sm:$0x1] %vm7_vm0, %v293_v36   ;;  %587 = vst.msk [vmem:[%s1294_s1 + $0x63] sm:$0x2] %vm7_vm0, %v293_v36  }
  0xc4   :  { %v301_v37 = vpop.permute.xlu0 %300  }
  0xc5   :  { %v309_v38 = vpop.permute.xlu1 %308   ;;  %588 = vst.msk [vmem:[%s1294_s1 + $0x25] sm:$0x1] %vm7_vm0, %v301_v37   ;;  %589 = vst.msk [vmem:[%s1294_s1 + $0x64] sm:$0x2] %vm7_vm0, %v301_v37  }
  0xc6   :  { %590 = vst.msk [vmem:[%s1294_s1 + $0x26] sm:$0x1] %vm7_vm0, %v309_v38   ;;  %591 = vst.msk [vmem:[%s1294_s1 + $0x65] sm:$0x2] %vm7_vm0, %v309_v38  }
  0xc8   :  { %v317_v39 = vpop.permute.xlu0 %316  }
  0xc9   :  { %v325_v40 = vpop.permute.xlu1 %324   ;;  %592 = vst.msk [vmem:[%s1294_s1 + $0x27] sm:$0x1] %vm7_vm0, %v317_v39   ;;  %593 = vst.msk [vmem:[%s1294_s1 + $0x66] sm:$0x2] %vm7_vm0, %v317_v39  }
  0xca   :  { %594 = vst.msk [vmem:[%s1294_s1 + $0x28] sm:$0x1] %vm7_vm0, %v325_v40   ;;  %595 = vst.msk [vmem:[%s1294_s1 + $0x67] sm:$0x2] %vm7_vm0, %v325_v40  }
  0xcc   :  { %v333_v41 = vpop.permute.xlu0 %332  }
  0xcd   :  { %v341_v42 = vpop.permute.xlu1 %340   ;;  %596 = vst.msk [vmem:[%s1294_s1 + $0x29] sm:$0x1] %vm7_vm0, %v333_v41   ;;  %597 = vst.msk [vmem:[%s1294_s1 + $0x68] sm:$0x2] %vm7_vm0, %v333_v41  }
  0xce   :  { %598 = vst.msk [vmem:[%s1294_s1 + $0x2a] sm:$0x1] %vm7_vm0, %v341_v42   ;;  %599 = vst.msk [vmem:[%s1294_s1 + $0x69] sm:$0x2] %vm7_vm0, %v341_v42  }
  0xd0   :  { %v349_v43 = vpop.permute.xlu0 %348  }
  0xd1   :  { %v357_v44 = vpop.permute.xlu1 %356   ;;  %600 = vst.msk [vmem:[%s1294_s1 + $0x2b] sm:$0x1] %vm7_vm0, %v349_v43   ;;  %601 = vst.msk [vmem:[%s1294_s1 + $0x6a] sm:$0x2] %vm7_vm0, %v349_v43  }
  0xd2   :  { %602 = vst.msk [vmem:[%s1294_s1 + $0x2c] sm:$0x1] %vm7_vm0, %v357_v44   ;;  %603 = vst.msk [vmem:[%s1294_s1 + $0x6b] sm:$0x2] %vm7_vm0, %v357_v44  }
  0xd4   :  { %v365_v45 = vpop.permute.xlu0 %364  }
  0xd5   :  { %v373_v46 = vpop.permute.xlu1 %372   ;;  %604 = vst.msk [vmem:[%s1294_s1 + $0x2d] sm:$0x1] %vm7_vm0, %v365_v45   ;;  %605 = vst.msk [vmem:[%s1294_s1 + $0x6c] sm:$0x2] %vm7_vm0, %v365_v45  }
  0xd6   :  { %606 = vst.msk [vmem:[%s1294_s1 + $0x2e] sm:$0x1] %vm7_vm0, %v373_v46   ;;  %607 = vst.msk [vmem:[%s1294_s1 + $0x6d] sm:$0x2] %vm7_vm0, %v373_v46  }
  0xd8   :  { %v381_v47 = vpop.permute.xlu0 %380  }
  0xd9   :  { %v389_v48 = vpop.permute.xlu1 %388   ;;  %608 = vst.msk [vmem:[%s1294_s1 + $0x2f] sm:$0x1] %vm7_vm0, %v381_v47   ;;  %609 = vst.msk [vmem:[%s1294_s1 + $0x6e] sm:$0x2] %vm7_vm0, %v381_v47  }
  0xda   :  { %610 = vst.msk [vmem:[%s1294_s1 + $0x30] sm:$0x1] %vm7_vm0, %v389_v48   ;;  %611 = vst.msk [vmem:[%s1294_s1 + $0x6f] sm:$0x2] %vm7_vm0, %v389_v48  }
  0xdc   :  { %v397_v49 = vpop.permute.xlu0 %396  }
  0xdd   :  { %v405_v50 = vpop.permute.xlu1 %404   ;;  %612 = vst.msk [vmem:[%s1294_s1 + $0x31] sm:$0x1] %vm7_vm0, %v397_v49   ;;  %613 = vst.msk [vmem:[%s1294_s1 + $0x70] sm:$0x2] %vm7_vm0, %v397_v49  }
  0xde   :  { %614 = vst.msk [vmem:[%s1294_s1 + $0x32] sm:$0x1] %vm7_vm0, %v405_v50   ;;  %615 = vst.msk [vmem:[%s1294_s1 + $0x71] sm:$0x2] %vm7_vm0, %v405_v50  }
  0xe0   :  { %v413_v51 = vpop.permute.xlu0 %412  }
  0xe1   :  { %v421_v52 = vpop.permute.xlu1 %420   ;;  %616 = vst.msk [vmem:[%s1294_s1 + $0x33] sm:$0x1] %vm7_vm0, %v413_v51   ;;  %617 = vst.msk [vmem:[%s1294_s1 + $0x72] sm:$0x2] %vm7_vm0, %v413_v51  }
  0xe2   :  { %618 = vst.msk [vmem:[%s1294_s1 + $0x34] sm:$0x1] %vm7_vm0, %v421_v52   ;;  %619 = vst.msk [vmem:[%s1294_s1 + $0x73] sm:$0x2] %vm7_vm0, %v421_v52  }
  0xe4   :  { %v429_v53 = vpop.permute.xlu0 %428  }
  0xe5   :  { %v437_v54 = vpop.permute.xlu1 %436   ;;  %620 = vst.msk [vmem:[%s1294_s1 + $0x35] sm:$0x1] %vm7_vm0, %v429_v53   ;;  %621 = vst.msk [vmem:[%s1294_s1 + $0x74] sm:$0x2] %vm7_vm0, %v429_v53  }
  0xe6   :  { %622 = vst.msk [vmem:[%s1294_s1 + $0x36] sm:$0x1] %vm7_vm0, %v437_v54   ;;  %623 = vst.msk [vmem:[%s1294_s1 + $0x75] sm:$0x2] %vm7_vm0, %v437_v54  }
  0xe8   :  { %v445_v55 = vpop.permute.xlu0 %444  }
  0xe9   :  { %v453_v56 = vpop.permute.xlu1 %452   ;;  %624 = vst.msk [vmem:[%s1294_s1 + $0x37] sm:$0x1] %vm7_vm0, %v445_v55   ;;  %625 = vst.msk [vmem:[%s1294_s1 + $0x76] sm:$0x2] %vm7_vm0, %v445_v55  }
  0xea   :  { %626 = vst.msk [vmem:[%s1294_s1 + $0x38] sm:$0x1] %vm7_vm0, %v453_v56   ;;  %627 = vst.msk [vmem:[%s1294_s1 + $0x77] sm:$0x2] %vm7_vm0, %v453_v56  }
  0xec   :  { %v461_v57 = vpop.permute.xlu0 %460  }
  0xed   :  { %v469_v58 = vpop.permute.xlu1 %468   ;;  %628 = vst.msk [vmem:[%s1294_s1 + $0x39] sm:$0x1] %vm7_vm0, %v461_v57   ;;  %629 = vst.msk [vmem:[%s1294_s1 + $0x78] sm:$0x2] %vm7_vm0, %v461_v57  }
  0xee   :  { %630 = vst.msk [vmem:[%s1294_s1 + $0x3a] sm:$0x1] %vm7_vm0, %v469_v58   ;;  %631 = vst.msk [vmem:[%s1294_s1 + $0x79] sm:$0x2] %vm7_vm0, %v469_v58  }
  0xf0   :  { %v477_v59 = vpop.permute.xlu0 %476  }
  0xf1   :  { %v485_v60 = vpop.permute.xlu1 %484   ;;  %632 = vst.msk [vmem:[%s1294_s1 + $0x3b] sm:$0x1] %vm7_vm0, %v477_v59   ;;  %633 = vst.msk [vmem:[%s1294_s1 + $0x7a] sm:$0x2] %vm7_vm0, %v477_v59  }
  0xf2   :  { %634 = vst.msk [vmem:[%s1294_s1 + $0x3c] sm:$0x1] %vm7_vm0, %v485_v60   ;;  %635 = vst.msk [vmem:[%s1294_s1 + $0x7b] sm:$0x2] %vm7_vm0, %v485_v60  }
  0xf4   :  { %v493_v61 = vpop.permute.xlu0 %492  }
  0xf5   :  { %v501_v62 = vpop.permute.xlu1 %500   ;;  %636 = vst.msk [vmem:[%s1294_s1 + $0x3d] sm:$0x1] %vm7_vm0, %v493_v61   ;;  %637 = vst.msk [vmem:[%s1294_s1 + $0x7c] sm:$0x2] %vm7_vm0, %v493_v61  }
  0xf6   :  { %638 = vst.msk [vmem:[%s1294_s1 + $0x3e] sm:$0x1] %vm7_vm0, %v501_v62   ;;  %639 = vst.msk [vmem:[%s1294_s1 + $0x7d] sm:$0x2] %vm7_vm0, %v501_v62  }
  0xf8   :  { %v509_v63 = vpop.permute.xlu0 %508  }
  0xf9   :  { %640 = vst.msk [vmem:[%s1294_s1 + $0x3f] sm:$0x1] %vm7_vm0, %v509_v63   ;;  %641 = vst.msk [vmem:[%s1294_s1 + $0x7e] sm:$0x2] %vm7_vm0, %v509_v63  }

// kernel: sdnet_no_bn_encoder_block.1
= control target key start
LH: loop header
LB: loop body
LE: loop exit
PB: predicated region body
PF: predicated region fallthrough
CT: control target
= control target key end

     0   :  { %12 = vsyncpa [#allocation3], 0  ;;  %v1732_v3 = vmov 0   ;;  %vm138_vm0 = vcmask 818176   ;;  %vm163_vm1 = vcmask 1041408   ;;  %s2810_s0 = inlined_call_operand.vmem [shape: bf16[4,128,100], index: 0, kind: input, shape index: {}]   ;;  %s2811_s1 = inlined_call_operand.vmem [shape: bf16[100,64], index: 1, kind: input, shape index: {}]   ;;  %s2812_s2 = inlined_call_operand.vmem [shape: f32[1,64], index: 2, kind: input, shape index: {}]   ;;  %s2813_s3 = inlined_call_operand.vmem [shape: s32[128,1], index: 3, kind: input, shape index: {}]   ;;  %s2814_s4 = inlined_call_operand.vmem [shape: f32[4,128,64], index: 4, kind: output, shape index: {0}]   ;;  %s2815_s5 = inlined_call_operand.hbm [shape: f32[128,64], index: 5, kind: output, shape index: {1}]   ;;  %s2816_s6 = inlined_call_operand.hbm [shape: s32[128,64], index: 6, kind: output, shape index: {2}]  }
   0x1   :  { %v1645_v0 = vld [vmem:[%s2811_s1] sm:$0xff]   ;;  %v1646_v1 = vld [vmem:[%s2811_s1 + $0x8] sm:$0xff]   ;;  %v1647_v2 = vld [vmem:[%s2811_s1 + $0x10] sm:$0xff]   ;;  %1644 = vset.pattern.permute.xlu1 %v1732_v3  ;;  %1643 = vset.pattern.permute.xlu0 %v1732_v3 }
   0x2   :  { %1514 = vmatprep.subr.bf16.mxu0 %v1645_v0  ;;  %1544 = vmatprep.subr.bf16.mxu1 %v1645_v0  ;;  %v1786_v4 = vld [vmem:[%s2811_s1 + $0x18] sm:$0xff]   ;;  %v1652_v5 = vld [vmem:[%s2810_s0] sm:$0xff]   ;;  %v1810_v8 = vld [vmem:[%s2811_s1 + $0x28] sm:$0xff]  }
   0x3   :  { %1515 = vmatpush3.bf16.msra.mxu0 %v1645_v0  ;;  %1545 = vmatpush3.bf16.msra.mxu1 %v1645_v0  ;;  %v1653_v6 = vld [vmem:[%s2810_s0 + $0x40] sm:$0xff]   ;;  %v1815_v9 = vld [vmem:[%s2811_s1 + $0x30] ss:$0 sps:$4 sm:$0x33]   ;;  %v1654_v11 = vld [vmem:[%s2810_s0 + $0x8] sm:$0xff]  }
   0x4   :  { %1516 = vmatprep.subr.bf16.mxu0 %v1646_v1  ;;  %1546 = vmatprep.subr.bf16.mxu1 %v1646_v1  ;;  %v1801_v7 = vld [vmem:[%s2811_s1 + $0x20] sm:$0xff]   ;;  %v1829_v10 = vsel %vm163_vm1, %v1815_v9, 0  ;;  %v1655_v12 = vld [vmem:[%s2810_s0 + $0x48] sm:$0xff]   ;;  %v1656_v13 = vld [vmem:[%s2810_s0 + $0x10] sm:$0xff]  }
   0x5   :  { %1528 = vmatprep.mubr.msk.bf16.mxu0 %vm138_vm0, %v1652_v5  ;;  %1558 = vmatprep.mubr.msk.bf16.mxu1 %vm138_vm0, %v1653_v6  ;;  %v1657_v14 = vld [vmem:[%s2810_s0 + $0x50] sm:$0xff]   ;;  %v1658_v15 = vld [vmem:[%s2810_s0 + $0x18] sm:$0xff]   ;;  %v1660_v17 = vld [vmem:[%s2810_s0 + $0x20] sm:$0xff]  }
   0x6   :  { %v1659_v16 = vld [vmem:[%s2810_s0 + $0x58] sm:$0xff]   ;;  %v1661_v18 = vld [vmem:[%s2810_s0 + $0x60] sm:$0xff]   ;;  %v1124_v19 = vld [vmem:[%s2813_s3 + $0x10] sm:$0xff] }
   0x7   :  { %1517 = vmatpush3.bf16.msra.mxu0 %v1646_v1  ;;  %1547 = vmatpush3.bf16.msra.mxu1 %v1646_v1  ;;  %v1122_v20 = vld [vmem:[%s2813_s3] sm:$0xff]  ;;  %v1662_v21 = vld [vmem:[%s2810_s0 + $0x28] sm:$0xff]   ;;  %v1664_v23 = vld [vmem:[%s2810_s0 + $0x30] sm:$0xff]  }
   0x8   :  { %1518 = vmatprep.subr.bf16.mxu0 %v1647_v2  ;;  %1548 = vmatprep.subr.bf16.mxu1 %v1647_v2  ;;  %v1663_v22 = vld [vmem:[%s2810_s0 + $0x68] sm:$0xff]   ;;  %v1665_v24 = vld [vmem:[%s2810_s0 + $0x70] sm:$0xff]  }
   0x9   :  { %1161 = vperm.xlu1 %1644, %v1124_v19   ;;  %1155 = vperm.xlu0 %1643, %v1122_v20  }
   0xb   :  { %1519 = vmatpush3.bf16.msra.mxu0 %v1647_v2  ;;  %1549 = vmatpush3.bf16.msra.mxu1 %v1647_v2 }
   0xc   :  { %1520 = vmatprep.subr.bf16.mxu0 %v1786_v4  ;;  %1550 = vmatprep.subr.bf16.mxu1 %v1786_v4 }
   0xf   :  { %1521 = vmatpush3.bf16.msra.mxu0 %v1786_v4  ;;  %1551 = vmatpush3.bf16.msra.mxu1 %v1786_v4 }
  0x10   :  { %1522 = vmatprep.subr.bf16.mxu0 %v1801_v7  ;;  %1552 = vmatprep.subr.bf16.mxu1 %v1801_v7 }
  0x13   :  { %1523 = vmatpush3.bf16.msra.mxu0 %v1801_v7  ;;  %1553 = vmatpush3.bf16.msra.mxu1 %v1801_v7 }
  0x14   :  { %1524 = vmatprep.subr.bf16.mxu0 %v1810_v8  ;;  %1554 = vmatprep.subr.bf16.mxu1 %v1810_v8 }
  0x17   :  { %1525 = vmatpush3.bf16.msra.mxu0 %v1810_v8  ;;  %1555 = vmatpush3.bf16.msra.mxu1 %v1810_v8 }
  0x18   :  { %1634 = vmatprep.subr.msk.bf16.mxu0 %vm163_vm1, %v1815_v9  ;;  %1635 = vmatprep.subr.msk.bf16.mxu1 %vm163_vm1, %v1815_v9 }
  0x1b   :  { %1527 = vmatpush3.bf16.msra.mxu0 %v1829_v10  ;;  %1557 = vmatpush3.bf16.msra.mxu1 %v1829_v10 }
  0x1c   :  { %1574 = vmatprep.subr.bf16.mxu0 %v1645_v0  ;;  %1604 = vmatprep.subr.bf16.mxu1 %v1645_v0 }
  0x1e   :  { %1529 = vmatmul.mubr.msk.bf16.vlgmr.msra.gmra.mrb[0].mxu0 %vm138_vm0, %v1654_v11  ;;  %1559 = vmatmul.mubr.msk.bf16.vlgmr.msra.gmra.mrb[0].mxu1 %vm138_vm0, %v1655_v12 }
  0x1f   :  { %1575 = vmatpush3.bf16.msra.mxu0 %v1645_v0  ;;  %1605 = vmatpush3.bf16.msra.mxu1 %v1645_v0 }
  0x20   :  { %1576 = vmatprep.subr.bf16.mxu0 %v1646_v1  ;;  %1532 = vmatprep.mubr.msk.bf16.mxu0 %vm138_vm0, %v1656_v13 }
  0x21   :  { %1562 = vmatprep.mubr.msk.bf16.mxu1 %vm138_vm0, %v1657_v14  ;;  %1606 = vmatprep.subr.bf16.mxu1 %v1646_v1 }
  0x23   :  { %1577 = vmatpush3.bf16.msra.mxu0 %v1646_v1  ;;  %1607 = vmatpush3.bf16.msra.mxu1 %v1646_v1 }
  0x24   :  { %1578 = vmatprep.subr.bf16.mxu0 %v1647_v2  ;;  %1608 = vmatprep.subr.bf16.mxu1 %v1647_v2 }
  0x26   :  { %1533 = vmatmul.mubr.msk.bf16.gmra.mrb[4].mxu0 %vm138_vm0, %v1658_v15  ;;  %1563 = vmatmul.mubr.msk.bf16.gmra.mrb[4].mxu1 %vm138_vm0, %v1659_v16 }
  0x27   :  { %1579 = vmatpush3.bf16.msra.mxu0 %v1647_v2  ;;  %1609 = vmatpush3.bf16.msra.mxu1 %v1647_v2 }
  0x28   :  { %1580 = vmatprep.subr.bf16.mxu0 %v1786_v4  ;;  %1536 = vmatprep.mubr.msk.bf16.mxu0 %vm138_vm0, %v1660_v17 }
  0x29   :  { %1566 = vmatprep.mubr.msk.bf16.mxu1 %vm138_vm0, %v1661_v18  ;;  %1610 = vmatprep.subr.bf16.mxu1 %v1786_v4 }
  0x2b   :  { %1581 = vmatpush3.bf16.msra.mxu0 %v1786_v4  ;;  %1611 = vmatpush3.bf16.msra.mxu1 %v1786_v4 }
  0x2c   :  { %1582 = vmatprep.subr.bf16.mxu0 %v1801_v7  ;;  %1612 = vmatprep.subr.bf16.mxu1 %v1801_v7 }
  0x2d   :  { %13 = vsyncpa [#allocation5], 0  ;;  %v1125_v25 = vld [vmem:[%s2813_s3 + $0x18] sm:$0xff]  ;;  %v1123_v26 = vld [vmem:[%s2813_s3 + $0x8] sm:$0xff]  ;;  %vm280_vm2 = vcmask 523264   ;;  %s1733_s19 = smov [#allocation2]  }
  0x2e   :  { %1537 = vmatmul.mubr.msk.bf16.gmra.mrb[8].mxu0 %vm138_vm0, %v1662_v21  ;;  %1567 = vmatmul.mubr.msk.bf16.gmra.mrb[8].mxu1 %vm138_vm0, %v1663_v22  ;;  %v1666_v27 = vld [vmem:[%s2810_s0 + $0x38] sm:$0xff]   ;;  %v1668_v29 = vld [vmem:[%s2810_s0 + $0x80] sm:$0xff]   ;;  %v1127_v31 = vld [vmem:[%s2813_s3 + $0x28] sm:$0xff]  ;;  %s1257_s20 = sshll.u32 %s1733_s19, 4  ;;  %s1734_s23 = smov [#allocation4]   ;;  %s1258_s20 = int_to_ptr.vmem [resolvable:$true] %s1257_s20 }
  0x2f   :  { %1583 = vmatpush3.bf16.msra.mxu0 %v1801_v7  ;;  %1613 = vmatpush3.bf16.msra.mxu1 %v1801_v7  ;;  %v1667_v28 = vld [vmem:[%s2810_s0 + $0x78] sm:$0xff]   ;;  %v1669_v30 = vld [vmem:[%s2810_s0 + $0xc0] sm:$0xff]   ;;  %v1670_v33 = vld [vmem:[%s2810_s0 + $0x88] sm:$0xff]   ;;  %s1269_s24 = sshll.u32 %s1734_s23, 4  ;;  %s1684_s25 = scalar_lea.vmem %s1258_s20, 2048  ;;  %s1270_s24 = int_to_ptr.vmem [resolvable:$true] %s1269_s24 }
  0x30   :  { %1540 = vmatprep.mubr.msk.bf16.mxu0 %vm138_vm0, %v1664_v23  ;;  %1570 = vmatprep.mubr.msk.bf16.mxu1 %vm138_vm0, %v1665_v24  ;;  %v1126_v32 = vld [vmem:[%s2813_s3 + $0x20] sm:$0xff]  ;;  %v1671_v34 = vld [vmem:[%s2810_s0 + $0xc8] sm:$0xff]   ;;  %v1129_v35 = vld [vmem:[%s2813_s3 + $0x38] sm:$0xff]  ;;  %p1685_p0 = scmp.ne.s32.totalorder %s1258_s20, %s1684_s25  ;;  %p1689_p1 = scmp.lt.s32.totalorder %s1258_s20, %s1258_s20 }
  0x31   :  { %1584 = vmatprep.subr.bf16.mxu0 %v1810_v8  ;;  %1614 = vmatprep.subr.bf16.mxu1 %v1810_v8  ;;  %v1128_v36 = vld [vmem:[%s2813_s3 + $0x30] sm:$0xff]  ;;  %v1131_v39 = vld [vmem:[%s2813_s3 + $0x48] sm:$0xff]  ;;  %v1130_v40 = vld [vmem:[%s2813_s3 + $0x40] sm:$0xff]  ;;  %p1690_p2 = scmp.lt.s32.totalorder %s1684_s25, %s1684_s25 }
  0x32   :  { %1164 = vperm.xlu1 %1644, %v1125_v25   ;;  %1158 = vperm.xlu0 %1643, %v1123_v26   ;;  %v1672_v37 = vld [vmem:[%s2810_s0 + $0x90] sm:$0xff]   ;;  %v1674_v41 = vld [vmem:[%s2810_s0 + $0x98] sm:$0xff]   ;;  %v1676_v45 = vld [vmem:[%s2810_s0 + $0xa0] sm:$0xff]  }
  0x33   :  { %1585 = vmatpush3.bf16.msra.mxu0 %v1810_v8  ;;  %1615 = vmatpush3.bf16.msra.mxu1 %v1810_v8  ;;  %v1673_v38 = vld [vmem:[%s2810_s0 + $0xd0] sm:$0xff]   ;;  %v1675_v42 = vld [vmem:[%s2810_s0 + $0xd8] sm:$0xff]   ;;  %v1677_v46 = vld [vmem:[%s2810_s0 + $0xe0] sm:$0xff]   ;;  %p1691_p3 = por %p1690_p2, %p1689_p1 }
  0x34   :  { %1636 = vmatprep.subr.msk.bf16.mxu0 %vm163_vm1, %v1815_v9  ;;  %1637 = vmatprep.subr.msk.bf16.mxu1 %vm163_vm1, %v1815_v9  ;;  %v1133_v43 = vld [vmem:[%s2813_s3 + $0x58] sm:$0xff]  ;;  %v1132_v44 = vld [vmem:[%s2813_s3 + $0x50] sm:$0xff]  ;;  %v1135_v47 = vld [vmem:[%s2813_s3 + $0x68] sm:$0xff] }
  0x35   :  { %v1134_v48 = vld [vmem:[%s2813_s3 + $0x60] sm:$0xff]  ;;  %v1678_v49 = vld [vmem:[%s2810_s0 + $0xa8] sm:$0xff]   ;;  %v1137_v51 = vld [vmem:[%s2813_s3 + $0x78] sm:$0xff]  ;;  %p1692_p4 = pnand %p1691_p3, %p1685_p0 }
  0x36   :  { %1541 = vmatmul.mubr.msk.bf16.gmra.mrb[12].mxu0 %vm138_vm0, %v1666_v27  ;;  %1571 = vmatmul.mubr.msk.bf16.gmra.mrb[12].mxu1 %vm138_vm0, %v1667_v28  ;;  %v1679_v50 = vld [vmem:[%s2810_s0 + $0xe8] sm:$0xff]   ;;  %v1136_v52 = vld [vmem:[%s2813_s3 + $0x70] sm:$0xff]  ;;  %v1682_v55 = vld [vmem:[%s2810_s0 + $0xb8] sm:$0xff]  }
  0x37   :  { %1587 = vmatpush3.bf16.msra.mxu0 %v1829_v10  ;;  %1617 = vmatpush3.bf16.msra.mxu1 %v1829_v10  ;;  %v1680_v53 = vld [vmem:[%s2810_s0 + $0xb0] sm:$0xff]   ;;  %v1683_v56 = vld [vmem:[%s2810_s0 + $0xf8] sm:$0xff]   ;;  %v2022_v57 = vld [vmem:[%s2812_s2] ss:$0 sm:$0xff] }
  0x38   :  { %1588 = vmatprep.mubr.msk.bf16.mxu0 %vm138_vm0, %v1668_v29  ;;  %1618 = vmatprep.mubr.msk.bf16.mxu1 %vm138_vm0, %v1669_v30  ;;  %v1681_v54 = vld [vmem:[%s2810_s0 + $0xf0] sm:$0xff]  }
  0x39   :  { %1170 = vperm.xlu1 %1644, %v1127_v31   ;;  %1167 = vperm.xlu0 %1643, %v1126_v32  }
  0x3d   :  { %1176 = vperm.xlu1 %1644, %v1129_v35   ;;  %1173 = vperm.xlu0 %1643, %v1128_v36  }
  0x3e   :  { %1589 = vmatmul.mubr.msk.bf16.vlgmr.msra.gmra.mrb[16].mxu0 %vm138_vm0, %v1670_v33  ;;  %1619 = vmatmul.mubr.msk.bf16.vlgmr.msra.gmra.mrb[16].mxu1 %vm138_vm0, %v1671_v34 }
  0x3f   :  { %1592 = vmatprep.mubr.msk.bf16.mxu0 %vm138_vm0, %v1672_v37  ;;  %1622 = vmatprep.mubr.msk.bf16.mxu1 %vm138_vm0, %v1673_v38 }
  0x41   :  { %1182 = vperm.xlu1 %1644, %v1131_v39   ;;  %1179 = vperm.xlu0 %1643, %v1130_v40  }
  0x45   :  { %1188 = vperm.xlu1 %1644, %v1133_v43   ;;  %1185 = vperm.xlu0 %1643, %v1132_v44  }
  0x46   :  { %1593 = vmatmul.mubr.msk.bf16.gmra.mrb[20].mxu0 %vm138_vm0, %v1674_v41  ;;  %1623 = vmatmul.mubr.msk.bf16.gmra.mrb[20].mxu1 %vm138_vm0, %v1675_v42 }
  0x47   :  { %1596 = vmatprep.mubr.msk.bf16.mxu0 %vm138_vm0, %v1676_v45  ;;  %1626 = vmatprep.mubr.msk.bf16.mxu1 %vm138_vm0, %v1677_v46 }
  0x49   :  { %1194 = vperm.xlu1 %1644, %v1135_v47   ;;  %1191 = vperm.xlu0 %1643, %v1134_v48  }
  0x4d   :  { %1200 = vperm.xlu1 %1644, %v1137_v51   ;;  %1197 = vperm.xlu0 %1643, %v1136_v52  }
  0x4e   :  { %1597 = vmatmul.mubr.msk.bf16.gmra.mrb[24].mxu0 %vm138_vm0, %v1678_v49  ;;  %1627 = vmatmul.mubr.msk.bf16.gmra.mrb[24].mxu1 %vm138_vm0, %v1679_v50 }
  0x4f   :  { %1600 = vmatprep.mubr.msk.bf16.mxu0 %vm138_vm0, %v1680_v53  ;;  %1630 = vmatprep.mubr.msk.bf16.mxu1 %vm138_vm0, %v1681_v54 }
  0x56   :  { %1601 = vmatmul.mubr.msk.bf16.gmra.mrb[28].mxu0 %vm138_vm0, %v1682_v55  ;;  %1631 = vmatmul.mubr.msk.bf16.gmra.mrb[28].mxu1 %vm138_vm0, %v1683_v56 }
  0xf1   :  { %v1530_v58 = vpop.f32.mrb[0].mxu0  ;;  %v1560_v59 = vpop.f32.mrb[0].mxu1 }
  0xf2   :  { %v210_v60 = vadd.f32 %v1530_v58, %v2022_v57  ;;  %v421_v61 = vadd.f32 %v1560_v59, %v2022_v57  ;;  %v201_v62 = vpop.f32.mrb[1].mxu0  ;;  %v412_v63 = vpop.f32.mrb[1].mxu1 }
  0xf3   :  { %v202_v0 = vadd.f32 %v2022_v57, %v201_v62  ;;  %v413_v1 = vadd.f32 %v2022_v57, %v412_v63  ;;  %v1531_v2 = vpop.f32.mrb[2].mxu0  ;;  %v1561_v4 = vpop.f32.mrb[2].mxu1 }
  0xf4   :  { %v2028_v5 = vmax.f32 %v210_v60, 0.0  ;;  %v2030_v6 = vmax.f32 %v421_v61, 0.0  ;;  %v213_v7 = vadd.f32 %v1531_v2, %v2022_v57  ;;  %v424_v8 = vadd.f32 %v1561_v4, %v2022_v57  ;;  %v204_v9 = vpop.f32.mrb[3].mxu0  ;;  %v415_v10 = vpop.f32.mrb[3].mxu1 }
  0xf5   :  { %v2034_v11 = vmax.f32 %v202_v0, 0.0  ;;  %v2036_v12 = vmax.f32 %v413_v1, 0.0  ;;  %v205_v13 = vadd.f32 %v2022_v57, %v204_v9  ;;  %v416_v14 = vadd.f32 %v2022_v57, %v415_v10 }
  0xf6   :  { %283 = vst.msk [vmem:[%s2814_s4 + $0x10] sm:$0xff] %vm280_vm2, %v2028_v5  ;;  %1344 = vst.msk [vmem:[%s2814_s4 + $0x90] sm:$0xff] %vm280_vm2, %v2030_v6  ;;  %vm510_vm3 = vcmp.gt.f32.partialorder %v2030_v6, %v2028_v5  ;;  %v2052_v15 = vmax.f32 %v213_v7, 0.0  ;;  %v2054_v16 = vmax.f32 %v424_v8, 0.0 }
  0xf7   :  { %v2061_v17 = vsel %vm510_vm3, %v2030_v6, %v2028_v5  ;;  %281 = vst.msk [vmem:[%s2814_s4] sm:$0xff] %vm280_vm2, %v2034_v11  ;;  %1342 = vst.msk [vmem:[%s2814_s4 + $0x80] sm:$0xff] %vm280_vm2, %v2036_v12  ;;  %vm508_vm4 = vcmp.gt.f32.partialorder %v2036_v12, %v2034_v11  ;;  %v2075_v18 = vmax.f32 %v205_v13, 0.0  ;;  %v2096_v20 = vmax.f32 %v416_v14, 0.0 }
  0xf8   :  { %v2082_v19 = vsel %vm508_vm4, %v2036_v12, %v2034_v11  ;;  %284 = vst.msk [vmem:[%s2814_s4 + $0x18] sm:$0xff] %vm280_vm2, %v2052_v15  ;;  %1345 = vst.msk [vmem:[%s2814_s4 + $0x98] sm:$0xff] %vm280_vm2, %v2054_v16  ;;  %vm511_vm5 = vcmp.gt.f32.partialorder %v2054_v16, %v2052_v15  ;;  %v2304_v6 = vsel %vm508_vm4, 1, %v1732_v3 }
  0xf9   :  { %v2103_v21 = vsel %vm511_vm5, %v2054_v16, %v2052_v15  ;;  %282 = vst.msk [vmem:[%s2814_s4 + $0x8] sm:$0xff] %vm280_vm2, %v2075_v18  ;;  %v1534_v22 = vpop.f32.mrb[4].mxu0  ;;  %v1564_v23 = vpop.f32.mrb[4].mxu1  ;;  %1343 = vst.msk [vmem:[%s2814_s4 + $0x88] sm:$0xff] %vm280_vm2, %v2096_v20  ;;  %vm509_vm6 = vcmp.gt.f32.partialorder %v2096_v20, %v2075_v18 }
  0xfa   :  { %v226_v24 = vadd.f32 %v1534_v22, %v2022_v57  ;;  %v437_v25 = vadd.f32 %v1564_v23, %v2022_v57  ;;  %v217_v26 = vpop.f32.mrb[5].mxu0  ;;  %v428_v27 = vpop.f32.mrb[5].mxu1  ;;  %v2124_v28 = vsel %vm509_vm6, %v2096_v20, %v2075_v18 }
  0xfb   :  { %v218_v29 = vadd.f32 %v2022_v57, %v217_v26  ;;  %v429_v30 = vadd.f32 %v2022_v57, %v428_v27  ;;  %v1535_v31 = vpop.f32.mrb[6].mxu0  ;;  %v1565_v32 = vpop.f32.mrb[6].mxu1  ;;  %v2310_v26 = vsel %vm511_vm5, 1, %v1732_v3  ;;  %v2316_v27 = vsel %vm509_vm6, 1, %v1732_v3 }
  0xfc   :  { %v2128_v33 = vmax.f32 %v226_v24, 0.0  ;;  %v2130_v34 = vmax.f32 %v437_v25, 0.0  ;;  %v229_v35 = vadd.f32 %v1535_v31, %v2022_v57  ;;  %v440_v36 = vadd.f32 %v1565_v32, %v2022_v57  ;;  %v220_v37 = vpop.f32.mrb[7].mxu0  ;;  %v431_v38 = vpop.f32.mrb[7].mxu1 }
  0xfd   :  { %v2134_v39 = vmax.f32 %v218_v29, 0.0  ;;  %v2136_v40 = vmax.f32 %v429_v30, 0.0  ;;  %v221_v41 = vadd.f32 %v2022_v57, %v220_v37  ;;  %v432_v42 = vadd.f32 %v2022_v57, %v431_v38 }
  0xfe   :  { %287 = vst.msk [vmem:[%s2814_s4 + $0x30] sm:$0xff] %vm280_vm2, %v2128_v33  ;;  %1348 = vst.msk [vmem:[%s2814_s4 + $0xb0] sm:$0xff] %vm280_vm2, %v2130_v34  ;;  %vm514_vm7 = vcmp.gt.f32.partialorder %v2130_v34, %v2128_v33  ;;  %v2152_v43 = vmax.f32 %v229_v35, 0.0  ;;  %v2154_v44 = vmax.f32 %v440_v36, 0.0  ;;  %v2279_v24 = vsel %vm510_vm3, 1, %v1732_v3 }
  0xff   :  { %v2161_v45 = vsel %vm514_vm7, %v2130_v34, %v2128_v33  ;;  %285 = vst.msk [vmem:[%s2814_s4 + $0x20] sm:$0xff] %vm280_vm2, %v2134_v39  ;;  %1346 = vst.msk [vmem:[%s2814_s4 + $0xa0] sm:$0xff] %vm280_vm2, %v2136_v40  ;;  %vm512_vm8 = vcmp.gt.f32.partialorder %v2136_v40, %v2134_v39  ;;  %v2175_v46 = vmax.f32 %v221_v41, 0.0  ;;  %v2196_v48 = vmax.f32 %v432_v42, 0.0 }
 0x100   :  { %v2182_v47 = vsel %vm512_vm8, %v2136_v40, %v2134_v39  ;;  %288 = vst.msk [vmem:[%s2814_s4 + $0x38] sm:$0xff] %vm280_vm2, %v2152_v43  ;;  %1349 = vst.msk [vmem:[%s2814_s4 + $0xb8] sm:$0xff] %vm280_vm2, %v2154_v44  ;;  %vm515_vm9 = vcmp.gt.f32.partialorder %v2154_v44, %v2152_v43  ;;  %v2333_v16 = vsel %vm514_vm7, 1, %v1732_v3  ;;  %v2345_v31 = vsel %vm512_vm8, 1, %v1732_v3 }
 0x101   :  { %v2203_v49 = vsel %vm515_vm9, %v2154_v44, %v2152_v43  ;;  %286 = vst.msk [vmem:[%s2814_s4 + $0x28] sm:$0xff] %vm280_vm2, %v2175_v46  ;;  %v1538_v50 = vpop.f32.mrb[8].mxu0  ;;  %v1568_v51 = vpop.f32.mrb[8].mxu1  ;;  %1347 = vst.msk [vmem:[%s2814_s4 + $0xa8] sm:$0xff] %vm280_vm2, %v2196_v48  ;;  %vm513_vm10 = vcmp.gt.f32.partialorder %v2196_v48, %v2175_v46 }
 0x102   :  { %v242_v52 = vadd.f32 %v1538_v50, %v2022_v57  ;;  %v453_v53 = vadd.f32 %v1568_v51, %v2022_v57  ;;  %v233_v54 = vpop.f32.mrb[9].mxu0  ;;  %v444_v55 = vpop.f32.mrb[9].mxu1  ;;  %v2224_v56 = vsel %vm513_vm10, %v2196_v48, %v2175_v46  ;;  %v2374_v43 = vsel %vm513_vm10, 1, %v1732_v3 }
 0x103   :  { %v234_v58 = vadd.f32 %v2022_v57, %v233_v54  ;;  %v445_v59 = vadd.f32 %v2022_v57, %v444_v55  ;;  %v1539_v60 = vpop.f32.mrb[10].mxu0  ;;  %v1569_v61 = vpop.f32.mrb[10].mxu1  ;;  %v2360_v54 = vsel %vm515_vm9, 1, %v1732_v3 }
 0x104   :  { %v2228_v62 = vmax.f32 %v242_v52, 0.0  ;;  %v2230_v63 = vmax.f32 %v453_v53, 0.0  ;;  %v245_v0 = vadd.f32 %v1539_v60, %v2022_v57  ;;  %v456_v1 = vadd.f32 %v1569_v61, %v2022_v57  ;;  %v236_v2 = vpop.f32.mrb[11].mxu0  ;;  %v447_v4 = vpop.f32.mrb[11].mxu1 }
 0x105   :  { %v2234_v7 = vmax.f32 %v234_v58, 0.0  ;;  %v2236_v8 = vmax.f32 %v445_v59, 0.0  ;;  %v237_v9 = vadd.f32 %v2022_v57, %v236_v2  ;;  %v448_v10 = vadd.f32 %v2022_v57, %v447_v4  ;;  %v2389_v60 = vpop.permute.xlu0 %1155 }
 0x106   :  { %291 = vst.msk [vmem:[%s2814_s4 + $0x50] sm:$0xff] %vm280_vm2, %v2228_v62  ;;  %1352 = vst.msk [vmem:[%s2814_s4 + $0xd0] sm:$0xff] %vm280_vm2, %v2230_v63  ;;  %vm518_vm11 = vcmp.gt.f32.partialorder %v2230_v63, %v2228_v62  ;;  %v2252_v13 = vmax.f32 %v245_v0, 0.0  ;;  %v2254_v14 = vmax.f32 %v456_v1, 0.0 }
 0x107   :  { %v2261_v22 = vsel %vm518_vm11, %v2230_v63, %v2228_v62  ;;  %289 = vst.msk [vmem:[%s2814_s4 + $0x40] sm:$0xff] %vm280_vm2, %v2234_v7  ;;  %1350 = vst.msk [vmem:[%s2814_s4 + $0xc0] sm:$0xff] %vm280_vm2, %v2236_v8  ;;  %vm516_vm12 = vcmp.gt.f32.partialorder %v2236_v8, %v2234_v7  ;;  %v273_v23 = vmax.f32 %v237_v9, 0.0  ;;  %v484_v5 = vmax.f32 %v448_v10, 0.0 }
 0x108   :  { %v2286_v25 = vsel %vm516_vm12, %v2236_v8, %v2234_v7  ;;  %292 = vst.msk [vmem:[%s2814_s4 + $0x58] sm:$0xff] %vm280_vm2, %v2252_v13  ;;  %1353 = vst.msk [vmem:[%s2814_s4 + $0xd8] sm:$0xff] %vm280_vm2, %v2254_v14  ;;  %vm519_vm13 = vcmp.gt.f32.partialorder %v2254_v14, %v2252_v13  ;;  %v2395_v46 = vsel %vm518_vm11, 1, %v1732_v3  ;;  %v2414_v62 = vsel %vm516_vm12, 1, %v1732_v3 }
 0x109   :  { %v2323_v11 = vsel %vm519_vm13, %v2254_v14, %v2252_v13  ;;  %290 = vst.msk [vmem:[%s2814_s4 + $0x48] sm:$0xff] %vm280_vm2, %v273_v23  ;;  %v1542_v12 = vpop.f32.mrb[12].mxu0  ;;  %v1572_v15 = vpop.f32.mrb[12].mxu1  ;;  %1351 = vst.msk [vmem:[%s2814_s4 + $0xc8] sm:$0xff] %vm280_vm2, %v484_v5  ;;  %vm517_vm14 = vcmp.gt.f32.partialorder %v484_v5, %v273_v23  ;;  %v2420_v63 = vsel %vm519_vm13, 1, %v1732_v3 }
 0x10a   :  { %v258_v18 = vadd.f32 %v1542_v12, %v2022_v57  ;;  %v469_v20 = vadd.f32 %v1572_v15, %v2022_v57  ;;  %v249_v29 = vpop.f32.mrb[13].mxu0  ;;  %v460_v30 = vpop.f32.mrb[13].mxu1  ;;  %v2348_v32 = vsel %vm517_vm14, %v484_v5, %v273_v23  ;;  %v2424_v0 = vsel %vm517_vm14, 1, %v1732_v3 }
 0x10b   :  { %v250_v33 = vadd.f32 %v2022_v57, %v249_v29  ;;  %v461_v34 = vadd.f32 %v2022_v57, %v460_v30  ;;  %v1543_v35 = vpop.f32.mrb[14].mxu0  ;;  %v1573_v36 = vpop.f32.mrb[14].mxu1 }
 0x10c   :  { %v278_v37 = vmax.f32 %v258_v18, 0.0  ;;  %v489_v38 = vmax.f32 %v469_v20, 0.0  ;;  %v261_v41 = vadd.f32 %v1543_v35, %v2022_v57  ;;  %v472_v42 = vadd.f32 %v1573_v36, %v2022_v57  ;;  %v252_v50 = vpop.f32.mrb[15].mxu0  ;;  %v463_v51 = vpop.f32.mrb[15].mxu1 }
 0x10d   :  { %v276_v39 = vmax.f32 %v250_v33, 0.0  ;;  %v487_v40 = vmax.f32 %v461_v34, 0.0  ;;  %v253_v52 = vadd.f32 %v2022_v57, %v252_v50  ;;  %v464_v53 = vadd.f32 %v2022_v57, %v463_v51 }
 0x10e   :  { %295 = vst.msk [vmem:[%s2814_s4 + $0x70] sm:$0xff] %vm280_vm2, %v278_v37  ;;  %1356 = vst.msk [vmem:[%s2814_s4 + $0xf0] sm:$0xff] %vm280_vm2, %v489_v38  ;;  %vm522_vm15 = vcmp.gt.f32.partialorder %v489_v38, %v278_v37  ;;  %v279_v55 = vmax.f32 %v261_v41, 0.0  ;;  %v490_v58 = vmax.f32 %v472_v42, 0.0 }
 0x10f   :  { %v2377_v44 = vsel %vm522_vm15, %v489_v38, %v278_v37  ;;  %293 = vst.msk [vmem:[%s2814_s4 + $0x60] sm:$0xff] %vm280_vm2, %v276_v39  ;;  %1354 = vst.msk [vmem:[%s2814_s4 + $0xe0] sm:$0xff] %vm280_vm2, %v487_v40  ;;  %vm520_vm0 = vcmp.gt.f32.partialorder %v487_v40, %v276_v39  ;;  %v2387_v59 = vmax.f32 %v253_v52, 0.0  ;;  %v2408_v61 = vmax.f32 %v464_v53, 0.0  ;;  %v1162_v53 = vpop.permute.xlu1 %1161 }
 0x110   :  { %v2398_v48 = vsel %vm520_vm0, %v487_v40, %v276_v39  ;;  %296 = vst.msk [vmem:[%s2814_s4 + $0x78] sm:$0xff] %vm280_vm2, %v279_v55  ;;  %1357 = vst.msk [vmem:[%s2814_s4 + $0xf8] sm:$0xff] %vm280_vm2, %v490_v58  ;;  %vm523_vm1 = vcmp.gt.f32.partialorder %v490_v58, %v279_v55  ;;  %v2436_v7 = vsel %vm522_vm15, 1, %v1732_v3  ;;  %v2449_v14 = vsel %vm520_vm0, 1, %v1732_v3 }
 0x111   :  { %v2427_v1 = vsel %vm523_vm1, %v490_v58, %v279_v55  ;;  %294 = vst.msk [vmem:[%s2814_s4 + $0x68] sm:$0xff] %vm280_vm2, %v2387_v59  ;;  %v1590_v2 = vpop.f32.mrb[16].mxu0  ;;  %v1620_v4 = vpop.f32.mrb[16].mxu1  ;;  %1355 = vst.msk [vmem:[%s2814_s4 + $0xe8] sm:$0xff] %vm280_vm2, %v2408_v61  ;;  %vm521_vm3 = vcmp.gt.f32.partialorder %v2408_v61, %v2387_v59  ;;  %v2464_v36 = vsel %vm523_vm1, 1, %v1732_v3 }
 0x112   :  { %v680_v8 = vadd.f32 %v1590_v2, %v2022_v57  ;;  %v955_v9 = vadd.f32 %v1620_v4, %v2022_v57  ;;  %v671_v10 = vpop.f32.mrb[17].mxu0  ;;  %v946_v13 = vpop.f32.mrb[17].mxu1  ;;  %v2456_v23 = vsel %vm521_vm3, %v2408_v61, %v2387_v59 }
 0x113   :  { %v672_v5 = vadd.f32 %v2022_v57, %v671_v10  ;;  %v947_v12 = vadd.f32 %v2022_v57, %v946_v13  ;;  %v1591_v15 = vpop.f32.mrb[18].mxu0  ;;  %v1621_v18 = vpop.f32.mrb[18].mxu1 }
 0x114   :  { %v736_v20 = vmax.f32 %v680_v8, 0.0  ;;  %v1011_v29 = vmax.f32 %v955_v9, 0.0  ;;  %v683_v30 = vadd.f32 %v1591_v15, %v2022_v57  ;;  %v958_v33 = vadd.f32 %v1621_v18, %v2022_v57  ;;  %v674_v34 = vpop.f32.mrb[19].mxu0  ;;  %v949_v35 = vpop.f32.mrb[19].mxu1 }
 0x115   :  { %v734_v37 = vmax.f32 %v672_v5, 0.0  ;;  %v1009_v38 = vmax.f32 %v947_v12, 0.0  ;;  %v675_v41 = vadd.f32 %v2022_v57, %v674_v34  ;;  %v950_v51 = vadd.f32 %v2022_v57, %v949_v35  ;;  %v2489_v55 = vpop.permute.xlu0 %1158 }
 0x116   :  { %1392 = vst.msk [vmem:[%s2814_s4 + $0x110] sm:$0xff] %vm280_vm2, %v736_v20  ;;  %vm769_vm4 = vcmp.gt.f32.partialorder %v736_v20, %v2061_v17  ;;  %1440 = vst.msk [vmem:[%s2814_s4 + $0x190] sm:$0xff] %vm280_vm2, %v1011_v29  ;;  %v737_v42 = vmax.f32 %v683_v30, 0.0  ;;  %v1012_v50 = vmax.f32 %v958_v33, 0.0 }
 0x117   :  { %v785_v39 = vsel %vm769_vm4, %v736_v20, %v2061_v17  ;;  %v801_v40 = vsel %vm769_vm4, 1, %v1732_v3  ;;  %v817_v52 = vsel %vm769_vm4, 0, %v2279_v24  ;;  %1390 = vst.msk [vmem:[%s2814_s4 + $0x100] sm:$0xff] %vm280_vm2, %v734_v37  ;;  %vm767_vm5 = vcmp.gt.f32.partialorder %v734_v37, %v2082_v19  ;;  %1438 = vst.msk [vmem:[%s2814_s4 + $0x180] sm:$0xff] %vm280_vm2, %v1009_v38 }
 0x118   :  { %vm1044_vm6 = vcmp.gt.f32.partialorder %v1011_v29, %v785_v39  ;;  %v783_v17 = vsel %vm767_vm5, %v734_v37, %v2082_v19  ;;  %v799_v24 = vsel %vm767_vm5, 1, %v1732_v3  ;;  %v815_v58 = vsel %vm767_vm5, 0, %v2304_v6  ;;  %1393 = vst.msk [vmem:[%s2814_s4 + $0x118] sm:$0xff] %vm280_vm2, %v737_v42  ;;  %1441 = vst.msk [vmem:[%s2814_s4 + $0x198] sm:$0xff] %vm280_vm2, %v1012_v50 }
 0x119   :  { %v1060_v2 = vsel %vm1044_vm6, %v1011_v29, %v785_v39  ;;  %v1076_v4 = vsel %vm1044_vm6, 1, %v801_v40  ;;  %v1092_v8 = vsel %vm1044_vm6, 1, %v817_v52  ;;  %vm1042_vm7 = vcmp.gt.f32.partialorder %v1009_v38, %v783_v17  ;;  %v1594_v9 = vpop.f32.mrb[20].mxu0  ;;  %v1624_v19 = vpop.f32.mrb[20].mxu1 }
 0x11a   :  { %1108 = vst.msk [vmem:[#allocation2 + $0x10] sm:$0xff] %vm280_vm2, %v1060_v2  ;;  %v1140_v10 = vmul.u32 16, %v1076_v4  ;;  %v1058_v6 = vsel %vm1042_vm7, %v1009_v38, %v783_v17  ;;  %v1074_v13 = vsel %vm1042_vm7, 1, %v799_v24  ;;  %v1090_v5 = vsel %vm1042_vm7, 1, %v815_v58  ;;  %v687_v12 = vpop.f32.mrb[21].mxu0  ;;  %v962_v15 = vpop.f32.mrb[21].mxu1 }
 0x11b   :  { %1106 = vst.msk [vmem:[#allocation2] sm:$0xff] %vm280_vm2, %v1058_v6  ;;  %v1138_v18 = vmul.u32 16, %v1074_v13  ;;  %vm770_vm8 = vcmp.gt.f32.partialorder %v737_v42, %v2103_v21  ;;  %v735_v20 = vmax.f32 %v675_v41, 0.0  ;;  %v1010_v29 = vmax.f32 %v950_v51, 0.0  ;;  %v1595_v30 = vpop.f32.mrb[22].mxu0  ;;  %v2505_v33 = vpop.f32.mrb[22].mxu1 }
 0x11c   :  { %v1204_v34 = vadd.s32 %v1162_v53, %v1140_v10  ;;  %v786_v35 = vsel %vm770_vm8, %v737_v42, %v2103_v21  ;;  %v802_v37 = vsel %vm770_vm8, 1, %v1732_v3  ;;  %v818_v38 = vsel %vm770_vm8, 0, %v2310_v26  ;;  %v2510_v39 = vpop.f32.mrb[23].mxu0  ;;  %v2512_v40 = vpop.f32.mrb[23].mxu1 }
 0x11d   :  { %v1202_v52 = vadd.s32 %v2389_v60, %v1138_v18  ;;  %vm1045_vm9 = vcmp.gt.f32.partialorder %v1012_v50, %v786_v35  ;;  %1391 = vst.msk [vmem:[%s2814_s4 + $0x108] sm:$0xff] %vm280_vm2, %v735_v20  ;;  %vm768_vm10 = vcmp.gt.f32.partialorder %v735_v20, %v2124_v28  ;;  %1439 = vst.msk [vmem:[%s2814_s4 + $0x188] sm:$0xff] %vm280_vm2, %v1010_v29  ;;  %v1165_v58 = vpop.permute.xlu1 %1164  ;;  %v2528_v2 = vpop.permute.xlu0 %1167 }
 0x11e   :  { %v696_v21 = vadd.f32 %v1594_v9, %v2022_v57  ;;  %v1220_v26 = vadd.s32 %v1204_v34, %v1092_v8  ;;  %v1061_v41 = vsel %vm1045_vm9, %v1012_v50, %v786_v35  ;;  %v1077_v42 = vsel %vm1045_vm9, 1, %v802_v37 }
 0x11f   :  { %v1093_v51 = vsel %vm1045_vm9, 1, %v818_v38  ;;  %v1218_v60 = vadd.s32 %v1202_v52, %v1090_v5  ;;  %1109 = vst.msk [vmem:[#allocation2 + $0x18] sm:$0xff] %vm280_vm2, %v1061_v41  ;;  %v1141_v53 = vmul.u32 16, %v1077_v42  ;;  %v784_v17 = vsel %vm768_vm10, %v735_v20, %v2124_v28 }
 0x120   :  { %v800_v24 = vsel %vm768_vm10, 1, %v1732_v3  ;;  %1236 = vst.msk [vmem:[#allocation4 + $0x10] sm:$0xff] %vm280_vm2, %v1220_v26  ;;  %v816_v4 = vsel %vm768_vm10, 0, %v2316_v27  ;;  %vm1043_vm11 = vcmp.gt.f32.partialorder %v1010_v29, %v784_v17  ;;  %v740_v8 = vmax.f32 %v696_v21, 0.0 }
 0x121   :  { %v971_v50 = vadd.f32 %v1624_v19, %v2022_v57  ;;  %1234 = vst.msk [vmem:[#allocation4] sm:$0xff] %vm280_vm2, %v1218_v60  ;;  %v1205_v9 = vadd.s32 %v1165_v58, %v1141_v53  ;;  %v1059_v10 = vsel %vm1043_vm11, %v1010_v29, %v784_v17  ;;  %v1075_v6 = vsel %vm1043_vm11, 1, %v800_v24  ;;  %v2534_v28 = vpop.f32.mrb[24].mxu0  ;;  %v2536_v5 = vpop.f32.mrb[24].mxu1 }
 0x122   :  { %v1091_v13 = vsel %vm1043_vm11, 1, %v816_v4  ;;  %1107 = vst.msk [vmem:[#allocation2 + $0x8] sm:$0xff] %vm280_vm2, %v1059_v10  ;;  %v1139_v18 = vmul.u32 16, %v1075_v6  ;;  %1396 = vst.msk [vmem:[%s2814_s4 + $0x130] sm:$0xff] %vm280_vm2, %v740_v8  ;;  %vm773_vm12 = vcmp.gt.f32.partialorder %v740_v8, %v2161_v45  ;;  %v688_v19 = vadd.f32 %v2022_v57, %v687_v12  ;;  %v703_v20 = vpop.f32.mrb[25].mxu0  ;;  %v2545_v29 = vpop.f32.mrb[25].mxu1 }
 0x123   :  { %v1015_v27 = vmax.f32 %v971_v50, 0.0  ;;  %v1221_v34 = vadd.s32 %v1205_v9, %v1093_v51  ;;  %v789_v35 = vsel %vm773_vm12, %v740_v8, %v2161_v45  ;;  %v805_v37 = vsel %vm773_vm12, 1, %v1732_v3  ;;  %v2550_v52 = vpop.f32.mrb[26].mxu0  ;;  %v2552_v21 = vpop.f32.mrb[26].mxu1 }
 0x124   :  { %v821_v38 = vsel %vm773_vm12, 0, %v2333_v16  ;;  %v1203_v26 = vadd.s32 %v2489_v55, %v1139_v18  ;;  %v738_v12 = vmax.f32 %v688_v19, 0.0  ;;  %v963_v41 = vadd.f32 %v2022_v57, %v962_v15  ;;  %v2560_v45 = vpop.f32.mrb[27].mxu0  ;;  %v2562_v42 = vpop.f32.mrb[27].mxu1 }
 0x125   :  { %1444 = vst.msk [vmem:[%s2814_s4 + $0x1b0] sm:$0xff] %vm280_vm2, %v1015_v27  ;;  %vm1048_vm13 = vcmp.gt.f32.partialorder %v1015_v27, %v789_v35  ;;  %1237 = vst.msk [vmem:[#allocation4 + $0x18] sm:$0xff] %vm280_vm2, %v1221_v34  ;;  %v699_v55 = vadd.f32 %v1595_v30, %v2022_v57  ;;  %v1174_v24 = vpop.permute.xlu0 %1173  ;;  %v2575_v50 = vpop.permute.xlu1 %1170  ;;  %v974_v10 = vadd.f32 %v2505_v33, %v2022_v57 }
 0x126   :  { %v1064_v16 = vsel %vm1048_vm13, %v1015_v27, %v789_v35  ;;  %v1080_v51 = vsel %vm1048_vm13, 1, %v805_v37  ;;  %v1096_v60 = vsel %vm1048_vm13, 1, %v821_v38  ;;  %v1219_v53 = vadd.s32 %v1203_v26, %v1091_v13  ;;  %1394 = vst.msk [vmem:[%s2814_s4 + $0x120] sm:$0xff] %vm280_vm2, %v738_v12 }
 0x127   :  { %1112 = vst.msk [vmem:[#allocation2 + $0x30] sm:$0xff] %vm280_vm2, %v1064_v16  ;;  %v1144_v17 = vmul.u32 16, %v1080_v51  ;;  %vm771_vm14 = vcmp.gt.f32.partialorder %v738_v12, %v2182_v47  ;;  %v1013_v15 = vmax.f32 %v963_v41, 0.0  ;;  %v741_v30 = vmax.f32 %v699_v55, 0.0 }
 0x128   :  { %v787_v58 = vsel %vm771_vm14, %v738_v12, %v2182_v47  ;;  %v803_v4 = vsel %vm771_vm14, 1, %v1732_v3  ;;  %v819_v8 = vsel %vm771_vm14, 0, %v2345_v31  ;;  %1235 = vst.msk [vmem:[#allocation4 + $0x8] sm:$0xff] %vm280_vm2, %v1219_v53  ;;  %v691_v47 = vadd.f32 %v2022_v57, %v2510_v39 }
 0x129   :  { %v1208_v9 = vadd.s32 %v1174_v24, %v1144_v17  ;;  %1442 = vst.msk [vmem:[%s2814_s4 + $0x1a0] sm:$0xff] %vm280_vm2, %v1013_v15  ;;  %vm1046_vm15 = vcmp.gt.f32.partialorder %v1013_v15, %v787_v58  ;;  %1397 = vst.msk [vmem:[%s2814_s4 + $0x138] sm:$0xff] %vm280_vm2, %v741_v30  ;;  %vm774_vm0 = vcmp.gt.f32.partialorder %v741_v30, %v2203_v49  ;;  %v2591_v18 = vpop.f32.mrb[28].mxu0  ;;  %v2593_v27 = vpop.f32.mrb[28].mxu1  ;;  %v1016_v26 = vmax.f32 %v974_v10, 0.0 }
 0x12a   :  { %v1062_v6 = vsel %vm1046_vm15, %v1013_v15, %v787_v58  ;;  %v1078_v31 = vsel %vm1046_vm15, 1, %v803_v4  ;;  %v1094_v13 = vsel %vm1046_vm15, 1, %v819_v8  ;;  %v790_v39 = vsel %vm774_vm0, %v741_v30, %v2203_v49  ;;  %v2598_v35 = vpop.f32.mrb[29].mxu0  ;;  %v2600_v37 = vpop.f32.mrb[29].mxu1 }
 0x12b   :  { %v1224_v19 = vadd.s32 %v1208_v9, %v1096_v60  ;;  %1110 = vst.msk [vmem:[#allocation2 + $0x20] sm:$0xff] %vm280_vm2, %v1062_v6  ;;  %v1142_v33 = vmul.u32 16, %v1078_v31  ;;  %v806_v34 = vsel %vm774_vm0, 1, %v1732_v3  ;;  %v822_v38 = vsel %vm774_vm0, 0, %v2360_v54  ;;  %v2605_v16 = vpop.f32.mrb[30].mxu0  ;;  %v2607_v51 = vpop.f32.mrb[30].mxu1 }
 0x12c   :  { %v739_v12 = vmax.f32 %v691_v47, 0.0  ;;  %v966_v41 = vadd.f32 %v2022_v57, %v2512_v40  ;;  %v712_v60 = vadd.f32 %v2534_v28, %v2022_v57  ;;  %v987_v55 = vadd.f32 %v2536_v5, %v2022_v57  ;;  %v2616_v53 = vpop.f32.mrb[31].mxu0  ;;  %v2618_v17 = vpop.f32.mrb[31].mxu1  ;;  %1445 = vst.msk [vmem:[%s2814_s4 + $0x1b8] sm:$0xff] %vm280_vm2, %v1016_v26 }
 0x12d   :  { %1240 = vst.msk [vmem:[#allocation4 + $0x30] sm:$0xff] %vm280_vm2, %v1224_v19  ;;  %v1206_v49 = vadd.s32 %v2528_v2, %v1142_v33  ;;  %v704_v54 = vadd.f32 %v2022_v57, %v703_v20  ;;  %vm1049_vm1 = vcmp.gt.f32.partialorder %v1016_v26, %v790_v39  ;;  %v979_v2 = vadd.f32 %v2022_v57, %v2545_v29  ;;  %v1177_v30 = vpop.permute.xlu1 %1176  ;;  %v1180_v47 = vpop.permute.xlu0 %1179 }
 0x12e   :  { %1395 = vst.msk [vmem:[%s2814_s4 + $0x128] sm:$0xff] %vm280_vm2, %v739_v12  ;;  %vm772_vm4 = vcmp.gt.f32.partialorder %v739_v12, %v2224_v56  ;;  %v1014_v40 = vmax.f32 %v966_v41, 0.0  ;;  %v1065_v5 = vsel %vm1049_vm1, %v1016_v26, %v790_v39  ;;  %v1081_v20 = vsel %vm1049_vm1, 1, %v806_v34 }
 0x12f   :  { %v1222_v28 = vadd.s32 %v1206_v49, %v1094_v13  ;;  %v1097_v15 = vsel %vm1049_vm1, 1, %v822_v38  ;;  %1113 = vst.msk [vmem:[#allocation2 + $0x38] sm:$0xff] %vm280_vm2, %v1065_v5  ;;  %v1145_v24 = vmul.u32 16, %v1081_v20  ;;  %v788_v58 = vsel %vm772_vm4, %v739_v12, %v2224_v56 }
 0x130   :  { %v804_v4 = vsel %vm772_vm4, 1, %v1732_v3  ;;  %v820_v8 = vsel %vm772_vm4, 0, %v2374_v43  ;;  %1443 = vst.msk [vmem:[%s2814_s4 + $0x1a8] sm:$0xff] %vm280_vm2, %v1014_v40  ;;  %vm1047_vm5 = vcmp.gt.f32.partialorder %v1014_v40, %v788_v58  ;;  %v744_v29 = vmax.f32 %v712_v60, 0.0 }
 0x131   :  { %1238 = vst.msk [vmem:[#allocation4 + $0x20] sm:$0xff] %vm280_vm2, %v1222_v28  ;;  %v1019_v9 = vmax.f32 %v987_v55, 0.0  ;;  %v742_v10 = vmax.f32 %v704_v54, 0.0  ;;  %v1209_v6 = vadd.s32 %v1177_v30, %v1145_v24  ;;  %v1063_v31 = vsel %vm1047_vm5, %v1014_v40, %v788_v58  ;;  %v1186_v54 = vpop.permute.xlu0 %1185  ;;  %v1183_v58 = vpop.permute.xlu1 %1182 }
 0x132   :  { %v1079_v56 = vsel %vm1047_vm5, 1, %v804_v4  ;;  %v1095_v13 = vsel %vm1047_vm5, 1, %v820_v8  ;;  %1111 = vst.msk [vmem:[#allocation2 + $0x28] sm:$0xff] %vm280_vm2, %v1063_v31  ;;  %1400 = vst.msk [vmem:[%s2814_s4 + $0x150] sm:$0xff] %vm280_vm2, %v744_v29  ;;  %vm777_vm6 = vcmp.gt.f32.partialorder %v744_v29, %v2261_v22  ;;  %v1017_v19 = vmax.f32 %v979_v2, 0.0 }
 0x133   :  { %v1143_v43 = vmul.u32 16, %v1079_v56  ;;  %1448 = vst.msk [vmem:[%s2814_s4 + $0x1d0] sm:$0xff] %vm280_vm2, %v1019_v9  ;;  %1398 = vst.msk [vmem:[%s2814_s4 + $0x140] sm:$0xff] %vm280_vm2, %v742_v10  ;;  %vm775_vm7 = vcmp.gt.f32.partialorder %v742_v10, %v2286_v25  ;;  %v1225_v33 = vadd.s32 %v1209_v6, %v1097_v15  ;;  %v793_v39 = vsel %vm777_vm6, %v744_v29, %v2261_v22 }
 0x134   :  { %v809_v34 = vsel %vm777_vm6, 1, %v1732_v3  ;;  %v825_v38 = vsel %vm777_vm6, 0, %v2395_v46  ;;  %vm1052_vm8 = vcmp.gt.f32.partialorder %v1019_v9, %v793_v39  ;;  %v791_v12 = vsel %vm775_vm7, %v742_v10, %v2286_v25  ;;  %1446 = vst.msk [vmem:[%s2814_s4 + $0x1c0] sm:$0xff] %vm280_vm2, %v1017_v19 }
 0x135   :  { %v1207_v26 = vadd.s32 %v2575_v50, %v1143_v43  ;;  %v807_v41 = vsel %vm775_vm7, 1, %v1732_v3  ;;  %1241 = vst.msk [vmem:[#allocation4 + $0x38] sm:$0xff] %vm280_vm2, %v1225_v33  ;;  %v1068_v49 = vsel %vm1052_vm8, %v1019_v9, %v793_v39  ;;  %v1084_v22 = vsel %vm1052_vm8, 1, %v809_v34  ;;  %v1192_v34 = vpop.permute.xlu0 %1191 }
 0x136   :  { %v1100_v60 = vsel %vm1052_vm8, 1, %v825_v38  ;;  %v823_v55 = vsel %vm775_vm7, 0, %v2414_v62  ;;  %1116 = vst.msk [vmem:[#allocation2 + $0x50] sm:$0xff] %vm280_vm2, %v1068_v49  ;;  %v1148_v50 = vmul.u32 16, %v1084_v22  ;;  %vm1050_vm9 = vcmp.gt.f32.partialorder %v1017_v19, %v791_v12 }
 0x137   :  { %v1223_v46 = vadd.s32 %v1207_v26, %v1095_v13  ;;  %v715_v25 = vadd.f32 %v2550_v52, %v2022_v57  ;;  %v1066_v40 = vsel %vm1050_vm9, %v1017_v19, %v791_v12  ;;  %v1082_v2 = vsel %vm1050_vm9, 1, %v807_v41 }
 0x138   :  { %v1098_v28 = vsel %vm1050_vm9, 1, %v823_v55  ;;  %v990_v5 = vadd.f32 %v2552_v21, %v2022_v57  ;;  %v1212_v20 = vadd.s32 %v1186_v54, %v1148_v50  ;;  %1114 = vst.msk [vmem:[#allocation2 + $0x40] sm:$0xff] %vm280_vm2, %v1066_v40  ;;  %v1146_v62 = vmul.u32 16, %v1082_v2 }
 0x139   :  { %1239 = vst.msk [vmem:[#allocation4 + $0x28] sm:$0xff] %vm280_vm2, %v1223_v46  ;;  %v745_v15 = vmax.f32 %v715_v25, 0.0  ;;  %v707_v24 = vadd.f32 %v2022_v57, %v2560_v45  ;;  %v982_v52 = vadd.f32 %v2022_v57, %v2562_v42  ;;  %v728_v8 = vadd.f32 %v2591_v18, %v2022_v57 }
 0x13a   :  { %v1020_v4 = vmax.f32 %v990_v5, 0.0  ;;  %v1003_v21 = vadd.f32 %v2593_v27, %v2022_v57  ;;  %v1228_v30 = vadd.s32 %v1212_v20, %v1100_v60  ;;  %v1210_v29 = vadd.s32 %v1180_v47, %v1146_v62 }
 0x13b   :  { %1401 = vst.msk [vmem:[%s2814_s4 + $0x158] sm:$0xff] %vm280_vm2, %v745_v15  ;;  %vm778_vm10 = vcmp.gt.f32.partialorder %v745_v15, %v2323_v11  ;;  %v743_v45 = vmax.f32 %v707_v24, 0.0  ;;  %v1018_v18 = vmax.f32 %v982_v52, 0.0  ;;  %v720_v22 = vadd.f32 %v2022_v57, %v2598_v35 }
 0x13c   :  { %v794_v9 = vsel %vm778_vm10, %v745_v15, %v2323_v11  ;;  %v810_v42 = vsel %vm778_vm10, 1, %v1732_v3  ;;  %v826_v10 = vsel %vm778_vm10, 0, %v2420_v63  ;;  %1449 = vst.msk [vmem:[%s2814_s4 + $0x1d8] sm:$0xff] %vm280_vm2, %v1020_v4  ;;  %1244 = vst.msk [vmem:[#allocation4 + $0x50] sm:$0xff] %vm280_vm2, %v1228_v30  ;;  %v1226_v27 = vadd.s32 %v1210_v29, %v1098_v28  ;;  %v1198_v28 = vpop.permute.xlu0 %1197 }
 0x13d   :  { %vm1053_vm11 = vcmp.gt.f32.partialorder %v1020_v4, %v794_v9  ;;  %1399 = vst.msk [vmem:[%s2814_s4 + $0x148] sm:$0xff] %vm280_vm2, %v743_v45  ;;  %vm776_vm12 = vcmp.gt.f32.partialorder %v743_v45, %v2348_v32  ;;  %v748_v11 = vmax.f32 %v728_v8, 0.0  ;;  %1447 = vst.msk [vmem:[%s2814_s4 + $0x1c8] sm:$0xff] %vm280_vm2, %v1018_v18  ;;  %v1023_v49 = vmax.f32 %v1003_v21, 0.0 }
 0x13e   :  { %v1069_v47 = vsel %vm1053_vm11, %v1020_v4, %v794_v9  ;;  %v1085_v63 = vsel %vm1053_vm11, 1, %v810_v42  ;;  %v1101_v6 = vsel %vm1053_vm11, 1, %v826_v10  ;;  %v792_v31 = vsel %vm776_vm12, %v743_v45, %v2348_v32  ;;  %1242 = vst.msk [vmem:[#allocation4 + $0x40] sm:$0xff] %vm280_vm2, %v1226_v27  ;;  %v1189_v32 = vpop.permute.xlu1 %1188 }
 0x13f   :  { %1117 = vst.msk [vmem:[#allocation2 + $0x58] sm:$0xff] %vm280_vm2, %v1069_v47  ;;  %v1149_v56 = vmul.u32 16, %v1085_v63  ;;  %v808_v13 = vsel %vm776_vm12, 1, %v1732_v3  ;;  %v824_v43 = vsel %vm776_vm12, 0, %v2424_v0  ;;  %vm1051_vm13 = vcmp.gt.f32.partialorder %v1018_v18, %v792_v31  ;;  %1404 = vst.msk [vmem:[%s2814_s4 + $0x170] sm:$0xff] %vm280_vm2, %v748_v11 }
 0x140   :  { %v1067_v19 = vsel %vm1051_vm13, %v1018_v18, %v792_v31  ;;  %v1083_v33 = vsel %vm1051_vm13, 1, %v808_v13  ;;  %v1099_v39 = vsel %vm1051_vm13, 1, %v824_v43  ;;  %vm781_vm14 = vcmp.gt.f32.partialorder %v748_v11, %v2377_v44  ;;  %1452 = vst.msk [vmem:[%s2814_s4 + $0x1f0] sm:$0xff] %vm280_vm2, %v1023_v49 }
 0x141   :  { %v1213_v38 = vadd.s32 %v1189_v32, %v1149_v56  ;;  %1115 = vst.msk [vmem:[#allocation2 + $0x48] sm:$0xff] %vm280_vm2, %v1067_v19  ;;  %v1147_v26 = vmul.u32 16, %v1083_v33  ;;  %v797_v12 = vsel %vm781_vm14, %v748_v11, %v2377_v44  ;;  %v813_v0 = vsel %vm781_vm14, 1, %v1732_v3 }
 0x142   :  { %v829_v41 = vsel %vm781_vm14, 0, %v2436_v7  ;;  %v995_v60 = vadd.f32 %v2022_v57, %v2600_v37  ;;  %v731_v50 = vadd.f32 %v2605_v16, %v2022_v57  ;;  %v1006_v25 = vadd.f32 %v2607_v51, %v2022_v57  ;;  %v2747_v24 = vpop.permute.xlu1 %1194 }
 0x143   :  { %v1229_v55 = vadd.s32 %v1213_v38, %v1101_v6  ;;  %v1211_v46 = vadd.s32 %v1183_v58, %v1147_v26  ;;  %vm1056_vm15 = vcmp.gt.f32.partialorder %v1023_v49, %v797_v12  ;;  %v746_v44 = vmax.f32 %v720_v22, 0.0 }
 0x144   :  { %v1021_v7 = vmax.f32 %v995_v60, 0.0  ;;  %v723_v35 = vadd.f32 %v2022_v57, %v2616_v53  ;;  %v1072_v54 = vsel %vm1056_vm15, %v1023_v49, %v797_v12  ;;  %v1088_v40 = vsel %vm1056_vm15, 1, %v813_v0 }
 0x145   :  { %1245 = vst.msk [vmem:[#allocation4 + $0x58] sm:$0xff] %vm280_vm2, %v1229_v55  ;;  %v1227_v37 = vadd.s32 %v1211_v46, %v1099_v39  ;;  %v1104_v16 = vsel %vm1056_vm15, 1, %v829_v41  ;;  %1120 = vst.msk [vmem:[#allocation2 + $0x70] sm:$0xff] %vm280_vm2, %v1072_v54  ;;  %v1152_v51 = vmul.u32 16, %v1088_v40  ;;  %vm779_vm0 = vcmp.gt.f32.partialorder %v746_v44, %v2398_v48 }
 0x146   :  { %1402 = vst.msk [vmem:[%s2814_s4 + $0x160] sm:$0xff] %vm280_vm2, %v746_v44  ;;  %1450 = vst.msk [vmem:[%s2814_s4 + $0x1e0] sm:$0xff] %vm280_vm2, %v1021_v7  ;;  %v749_v53 = vmax.f32 %v731_v50, 0.0  ;;  %v1024_v2 = vmax.f32 %v1006_v25, 0.0  ;;  %v795_v5 = vsel %vm779_vm0, %v746_v44, %v2398_v48  ;;  %v811_v20 = vsel %vm779_vm0, 1, %v1732_v3  ;;  %v1201_v27 = vpop.permute.xlu1 %1200 }
 0x147   :  { %1243 = vst.msk [vmem:[#allocation4 + $0x48] sm:$0xff] %vm280_vm2, %v1227_v37  ;;  %v827_v62 = vsel %vm779_vm0, 0, %v2449_v14  ;;  %v747_v15 = vmax.f32 %v723_v35, 0.0  ;;  %v1216_v58 = vadd.s32 %v1198_v28, %v1152_v51  ;;  %vm1054_vm1 = vcmp.gt.f32.partialorder %v1021_v7, %v795_v5 }
 0x148   :  { %1405 = vst.msk [vmem:[%s2814_s4 + $0x178] sm:$0xff] %vm280_vm2, %v749_v53  ;;  %vm782_vm4 = vcmp.gt.f32.partialorder %v749_v53, %v2427_v1  ;;  %1453 = vst.msk [vmem:[%s2814_s4 + $0x1f8] sm:$0xff] %vm280_vm2, %v1024_v2  ;;  %v998_v48 = vadd.f32 %v2022_v57, %v2618_v17  ;;  %v1070_v14 = vsel %vm1054_vm1, %v1021_v7, %v795_v5  ;;  %v1086_v4 = vsel %vm1054_vm1, 1, %v811_v20 }
 0x149   :  { %v1102_v52 = vsel %vm1054_vm1, 1, %v827_v62  ;;  %v798_v8 = vsel %vm782_vm4, %v749_v53, %v2427_v1  ;;  %1403 = vst.msk [vmem:[%s2814_s4 + $0x168] sm:$0xff] %vm280_vm2, %v747_v15  ;;  %v1232_v21 = vadd.s32 %v1216_v58, %v1104_v16  ;;  %1118 = vst.msk [vmem:[#allocation2 + $0x60] sm:$0xff] %vm280_vm2, %v1070_v14  ;;  %v1150_v30 = vmul.u32 16, %v1086_v4 }
 0x14a   :  { %v814_v29 = vsel %vm782_vm4, 1, %v1732_v3  ;;  %v830_v45 = vsel %vm782_vm4, 0, %v2464_v36  ;;  %v553_v57 = vsel %vm521_vm3, 1, %v1732_v3  ;;  %vm1057_vm5 = vcmp.gt.f32.partialorder %v1024_v2, %v798_v8 }
 0x14b   :  { %vm780_vm6 = vcmp.gt.f32.partialorder %v747_v15, %v2456_v23  ;;  %v1022_v1 = vmax.f32 %v998_v48, 0.0  ;;  %1248 = vst.msk [vmem:[#allocation4 + $0x70] sm:$0xff] %vm280_vm2, %v1232_v21  ;;  %v1214_v17 = vadd.s32 %v1192_v34, %v1150_v30  ;;  %v1073_v9 = vsel %vm1057_vm5, %v1024_v2, %v798_v8 }
 0x14c   :  { %v1089_v42 = vsel %vm1057_vm5, 1, %v814_v29  ;;  %v1105_v10 = vsel %vm1057_vm5, 1, %v830_v45  ;;  %1121 = vst.msk [vmem:[#allocation2 + $0x78] sm:$0xff] %vm280_vm2, %v1073_v9  ;;  %v796_v18 = vsel %vm780_vm6, %v747_v15, %v2456_v23  ;;  %v812_v59 = vsel %vm780_vm6, 1, %v1732_v3 }
 0x14d   :  { %v1153_v36 = vmul.u32 16, %v1089_v42  ;;  %v828_v61 = vsel %vm780_vm6, 0, %v553_v57  ;;  %1451 = vst.msk [vmem:[%s2814_s4 + $0x1e8] sm:$0xff] %vm280_vm2, %v1022_v1  ;;  %v1230_v11 = vadd.s32 %v1214_v17, %v1102_v52  ;;  %vm1055_vm3 = vcmp.gt.f32.partialorder %v1022_v1, %v796_v18 }
 0x14e   :  { %v1071_v63 = vsel %vm1055_vm3, %v1022_v1, %v796_v18  ;;  %v1087_v6 = vsel %vm1055_vm3, 1, %v812_v59  ;;  %v1103_v31 = vsel %vm1055_vm3, 1, %v828_v61 }
 0x14f   :  { %v1217_v47 = vadd.s32 %v1201_v27, %v1153_v36  ;;  %1246 = vst.msk [vmem:[#allocation4 + $0x60] sm:$0xff] %vm280_vm2, %v1230_v11  ;;  %1119 = vst.msk [vmem:[#allocation2 + $0x68] sm:$0xff] %vm280_vm2, %v1071_v63  ;;  %v1151_v23 = vmul.u32 16, %v1087_v6 }
 0x151   :  { %v1233_v3 = vadd.s32 %v1217_v47, %v1105_v10 }
 0x152   :  { %1695 = shalt.err (!%p1692_p4)
}
 0x153   :  { %s1696_s27 = scalar_lea.hbm %s2815_s5, 2048 }
 0x154   :  { %p1697_p5 = scmp.ne.s32.totalorder %s2815_s5, %s1696_s27  ;;  %p1700_p6 = scmp.lt.u32.totalorder %s1696_s27, %s2815_s5 }
 0x156   :  { %p1702_p7 = pnand %p1700_p6, %p1697_p5 }
 0x158   :  { %1705 = shalt.err (!%p1702_p7)
}
 0x159   :  { %s1735_s7 = smov 128   ;;  %s1736_s0 = smov 8   ;;  %v1215_v56 = vadd.s32 %v2747_v24, %v1151_v23  ;;  %1249 = vst.msk [vmem:[#allocation4 + $0x78] sm:$0xff] %vm280_vm2, %v1233_v3 }
 0x15a   :  { %1263 = dma.vmem_to_hbm [thread:$0]  %s1258_s20, 2048, %s2815_s5, [#allocation3], %s1735_s7, %s1735_s7, %s1736_s0  }
 0x15b   :  { %v1231_v13 = vadd.s32 %v1215_v56, %v1103_v31  ;;  %s1706_s9 = scalar_lea.vmem %s1270_s24, 2048  ;;  %p1711_p9 = scmp.lt.s32.totalorder %s1270_s24, %s1270_s24 }
 0x15c   :  { %p1707_p8 = scmp.ne.s32.totalorder %s1270_s24, %s1706_s9  ;;  %p1712_p10 = scmp.lt.s32.totalorder %s1706_s9, %s1706_s9 }
 0x15d   :  { %1247 = vst.msk [vmem:[#allocation4 + $0x68] sm:$0xff] %vm280_vm2, %v1231_v13 }
 0x15e   :  { %p1713_p11 = por %p1712_p10, %p1711_p9 }
 0x160   :  { %p1714_p12 = pnand %p1713_p11, %p1707_p8 }
 0x162   :  { %1717 = shalt.err (!%p1714_p12)
}
 0x163   :  { %s1718_s12 = scalar_lea.hbm %s2816_s6, 2048 }
 0x164   :  { %p1719_p13 = scmp.ne.s32.totalorder %s2816_s6, %s1718_s12  ;;  %p1722_p0 = scmp.lt.u32.totalorder %s1718_s12, %s2816_s6 }
 0x166   :  { %p1724_p1 = pnand %p1722_p0, %p1719_p13 }
 0x168   :  { %1727 = shalt.err (!%p1724_p1)
}
 0x169   :  { %1275 = dma.vmem_to_hbm [thread:$0]  %s1270_s24, 2048, %s2816_s6, [#allocation5], %s1735_s7, %s1735_s7, %s1736_s0  }
 0x16a   :  { %1728 = dma.done.wait [#allocation3], 2048  }
 0x16b   :  { %1729 = vsyncadd [#allocation3], 4294965248 }
 0x16c   :  { %1730 = dma.done.wait [#allocation5], 2048  }
 0x16d   :  { %1731 = vsyncadd [#allocation5], 4294965248 }
 0x16e   :  { %1284 = vsyncpa [#allocation3], 1 }
 0x16f   :  { %1285 = vsyncpa [#allocation5], 1 }

</bundles_post_ra>
